<compile_context>
chip_gen: v6e
topology: v6e:2x2x1
jax: 0.10.0
libtpu: 0.0.40
codegen_flags: <defaults>
</compile_context>

<pallas_src>
import functools
import math

import jax
import jax.numpy as jnp
from jax.experimental import pallas as pl
from jax.experimental.pallas import tpu as pltpu


# ----------------------------- Pallas kernel -----------------------------

def lstm_fc_kernel(*refs, num_layers: int, seq_len: int, batch: int):
    # refs = (x_ref, [w_ih_T, w_hh_T, b]*num_layers, w_fc_T, b_fc, out_ref)
    x_ref = refs[0]
    param_refs = refs[1:-1]
    out_ref = refs[-1]

    T, B = seq_len, batch

    x2d = x_ref[...]                     # [T*B, D] time-major, flattened in wrapper
    h = None
    p = 0
    for layer in range(num_layers):
        w_ih_T = param_refs[p][...]      # [D_in, 4H]  (fp32 or bf16; g-cols pre-scaled by 2)
        w_hh_T = param_refs[p + 1][...]  # [H, 4H]     fp32 always (latency-bound recurrence)
        b = param_refs[p + 2][...]       # [1, 4H]     fp32 (b_ih + b_hh, g-slice pre-scaled by 2)
        p += 3
        H = w_hh_T.shape[0]

        # ---- Hoisted input projection: one batched matmul for all T steps. ----
        gates_in = (jnp.dot(x2d.astype(w_ih_T.dtype), w_ih_T,
                            preferred_element_type=jnp.float32)
                    + b)                                         # [T*B, 4H] f32

        # ---- Recurrence: fully unrolled time loop (T small & static). ----
        h = jnp.zeros((B, H), jnp.float32)
        c = jnp.zeros((B, H), jnp.float32)
        hs = []
        for t in range(T):
            gates = gates_in[t * B:(t + 1) * B, :] + jnp.dot(
                h, w_hh_T, preferred_element_type=jnp.float32)   # [B, 4H] f32
            sig = jax.nn.sigmoid(gates)                          # single whole-vreg EUP pass
            i_g = sig[:, 0 * H:1 * H]
            f_g = sig[:, 1 * H:2 * H]
            g_g = 2.0 * sig[:, 2 * H:3 * H] - 1.0                # tanh via pre-scaled sigmoid
            o_g = sig[:, 3 * H:4 * H]
            c = f_g * c + i_g * g_g
            h = o_g * jnp.tanh(c)
            hs.append(h)

        if layer < num_layers - 1:
            # Next layer's input stays in vregs: one concat, no VMEM round trip.
            x2d = jnp.concatenate(hs, axis=0)                    # [T*B, H]

    # ---- FC head on the final timestep of the last layer (lane-dense, padded). ----
    w_fc_T = param_refs[p][...]          # [H, O_pad] f32 (zero-padded to 128 lanes)
    b_fc = param_refs[p + 1][...]        # [1, O_pad] f32
    out_ref[...] = (jnp.dot(h, w_fc_T, preferred_element_type=jnp.float32) + b_fc)


# ----------------------------- One-time parameter prep -----------------------------

def prepare_params(lstm_params, fc_params, matmul_dtype=jnp.float32):
    """Pre-transpose weights, fold biases, fold the tanh-as-sigmoid 2x scale, and
    pad the FC head to 128 lanes — all once, not per forward call.

    matmul_dtype=jnp.bfloat16 applies ONLY to the hoisted input-projection weights
    (w_ih_T); the recurrent weights, biases and gate math stay fp32.
    """
    prepped = []
    for (w_ih, w_hh, b_ih, b_hh) in lstm_params:
        w_ih_T = jnp.asarray(w_ih, jnp.float32).T                # [D_in, 4H]
        w_hh_T = jnp.asarray(w_hh, jnp.float32).T                # [H, 4H]
        b = (jnp.asarray(b_ih, jnp.float32)
             + jnp.asarray(b_hh, jnp.float32)).reshape(1, -1)    # [1, 4H]
        H = w_hh_T.shape[0]
        # tanh(x) = 2*sigmoid(2x) - 1: pre-scale the g-gate pre-activation by 2.
        scale = jnp.ones((1, 4 * H), jnp.float32).at[:, 2 * H:3 * H].set(2.0)
        prepped.append((w_ih_T * scale).astype(matmul_dtype))    # projection (bf16 optional)
        prepped.append(w_hh_T * scale)                           # recurrence (fp32 always)
        prepped.append(b * scale)

    w_fc, b_fc = fc_params
    O, H = w_fc.shape
    O_pad = max(128, ((O + 127) // 128) * 128)                   # lane-dense FC head
    w_fc_T = jnp.zeros((H, O_pad), jnp.float32).at[:, :O].set(
        jnp.asarray(w_fc, jnp.float32).T)
    b_fc_p = jnp.zeros((1, O_pad), jnp.float32).at[:, :O].set(
        jnp.asarray(b_fc, jnp.float32))
    prepped.append(w_fc_T)
    prepped.append(b_fc_p)
    return tuple(prepped)


# ----------------------------- Forward wrapper -----------------------------

@functools.partial(jax.jit, static_argnames=("out_dim",))
def network_forward(x_btd, prepped, out_dim):
    """x_btd: [B, T, D] float32 (PyTorch batch_first layout). prepped: prepare_params(...)."""
    B, T, D = x_btd.shape
    num_layers = (len(prepped) - 2) // 3
    O_pad = prepped[-1].shape[-1]

    # Flatten to time-major 2D once here (XLA fuses this into one small copy);
    # the kernel never reshapes across the (8,128) tile layout.
    x_flat = jnp.transpose(x_btd, (1, 0, 2)).reshape(T * B, D).astype(jnp.float32)

    kernel = functools.partial(lstm_fc_kernel, num_layers=num_layers,
                               seq_len=T, batch=B)
    flat_inputs = (x_flat,) + tuple(prepped)

    out_padded = pl.pallas_call(
        kernel,
        out_shape=jax.ShapeDtypeStruct((B, O_pad), jnp.float32),
        in_specs=[pl.BlockSpec(memory_space=pltpu.MemorySpace.VMEM)
                  for _ in flat_inputs],
        out_specs=pl.BlockSpec(memory_space=pltpu.MemorySpace.VMEM),
    )(*flat_inputs)
    return out_padded[:, :out_dim]


# ----------------------------- Deterministic params -----------------------------

def init_params(key, input_dim, hidden_dim, layer_dim, output_dim):
    k = 1.0 / math.sqrt(hidden_dim)
    lstm_params = []
    for layer in range(layer_dim):
        in_sz = input_dim if layer == 0 else hidden_dim
        key, k1, k2, k3, k4 = jax.random.split(key, 5)
        w_ih = jax.random.uniform(k1, (4 * hidden_dim, in_sz), jnp.float32, -k, k)
        w_hh = jax.random.uniform(k2, (4 * hidden_dim, hidden_dim), jnp.float32, -k, k)
        b_ih = jax.random.uniform(k3, (4 * hidden_dim,), jnp.float32, -k, k)
        b_hh = jax.random.uniform(k4, (4 * hidden_dim,), jnp.float32, -k, k)
        lstm_params.append((w_ih, w_hh, b_ih, b_hh))
    key, k5, k6 = jax.random.split(key, 3)
    w_fc = jax.random.uniform(k5, (output_dim, hidden_dim), jnp.float32, -k, k)
    b_fc = jax.random.uniform(k6, (output_dim,), jnp.float32, -k, k)
    return lstm_params, (w_fc, b_fc)


# ----------------------------- Pure-JAX reference -----------------------------

def reference_forward(x, lstm_params, fc_params):
    B, T, _ = x.shape
    h_in = x
    for (w_ih, w_hh, b_ih, b_hh) in lstm_params:
        H = w_hh.shape[1]
        h = jnp.zeros((B, H), jnp.float32)
        c = jnp.zeros((B, H), jnp.float32)
        outs = []
        for t in range(T):
            g = h_in[:, t, :] @ w_ih.T + b_ih + h @ w_hh.T + b_hh
            i_g = jax.nn.sigmoid(g[:, 0 * H:1 * H])
            f_g = jax.nn.sigmoid(g[:, 1 * H:2 * H])
            g_g = jnp.tanh(g[:, 2 * H:3 * H])
            o_g = jax.nn.sigmoid(g[:, 3 * H:4 * H])
            c = f_g * c + i_g * g_g
            h = o_g * jnp.tanh(c)
            outs.append(h)
        h_in = jnp.stack(outs, axis=1)
    w_fc, b_fc = fc_params
    return h_in[:, -1, :] @ w_fc.T + b_fc


# ----------------------------- Main -----------------------------

if __name__ == "__main__":
    # Network(input_dim=16, hidden_dim=32, layer_dim=2, output_dim=4)
    B, T, D, H, L, O = 2, 8, 16, 32, 2, 4

    key = jax.random.PRNGKey(0)
    key, xkey = jax.random.split(key)
    x = jax.random.normal(xkey, (B, T, D), jnp.float32)

    lstm_params, fc_params = init_params(key, D, H, L, O)
    ref = reference_forward(x, lstm_params, fc_params)

    # fp32 matmul path (tanh computed via the exact 2*sigmoid(2x)-1 identity; only
    # the EUP approximation differs slightly from a direct tanh).
    prepped_f32 = prepare_params(lstm_params, fc_params, jnp.float32)
    out = jax.block_until_ready(network_forward(x, prepped_f32, out_dim=O))
    assert out.shape == (B, O), out.shape
    assert jnp.allclose(out, ref, rtol=1e-3, atol=1e-3), (out, ref)

    # bf16 path: bf16 operands only on the hoisted input projection (MXU-throughput
    # part); the recurrence, gate math and cell state stay fp32.
    prepped_bf16 = prepare_params(lstm_params, fc_params, jnp.bfloat16)
    out_bf16 = jax.block_until_ready(network_forward(x, prepped_bf16, out_dim=O))
    assert out_bf16.shape == (B, O), out_bf16.shape
    assert jnp.allclose(out_bf16, ref, rtol=5e-2, atol=5e-2), (out_bf16, ref)

    print("KERNEL_OK")
</pallas_src>

<mosaic_0001>
module attributes {stable_mosaic.version = 11 : i64} {
  func.func @lstm_fc_kernel(%arg0: memref<16x16xf32, #tpu.memory_space<vmem>>, %arg1: memref<16x128xf32, #tpu.memory_space<vmem>>, %arg2: memref<32x128xf32, #tpu.memory_space<vmem>>, %arg3: memref<1x128xf32, #tpu.memory_space<vmem>>, %arg4: memref<32x128xf32, #tpu.memory_space<vmem>>, %arg5: memref<32x128xf32, #tpu.memory_space<vmem>>, %arg6: memref<1x128xf32, #tpu.memory_space<vmem>>, %arg7: memref<32x128xf32, #tpu.memory_space<vmem>>, %arg8: memref<1x128xf32, #tpu.memory_space<vmem>>, %arg9: memref<2x128xf32, #tpu.memory_space<vmem>>) attributes {dimension_semantics = [], scalar_prefetch = 0 : i64, scratch_operands = 0 : i64, tpu.core_type = #tpu.core_type<tc>} {
    %c0 = arith.constant 0 : index
    %c0_0 = arith.constant 0 : index
    %0 = vector.load %arg0[%c0, %c0_0] : memref<16x16xf32, #tpu.memory_space<vmem>>, vector<16x16xf32>
    %c0_1 = arith.constant 0 : index
    %c0_2 = arith.constant 0 : index
    %1 = vector.load %arg1[%c0_1, %c0_2] : memref<16x128xf32, #tpu.memory_space<vmem>>, vector<16x128xf32>
    %c0_3 = arith.constant 0 : index
    %c0_4 = arith.constant 0 : index
    %2 = vector.load %arg2[%c0_3, %c0_4] : memref<32x128xf32, #tpu.memory_space<vmem>>, vector<32x128xf32>
    %c0_5 = arith.constant 0 : index
    %c0_6 = arith.constant 0 : index
    %3 = vector.load %arg3[%c0_5, %c0_6] : memref<1x128xf32, #tpu.memory_space<vmem>>, vector<1x128xf32>
    %cst = arith.constant dense<0.000000e+00> : vector<16x128xf32>
    %4 = tpu.matmul %0, %1, %cst {dimension_numbers = #tpu.dot_dimension_numbers<[1], [0], [0], [1], [0, 0, 1, 1], [], []>} : vector<16x16xf32>, vector<16x128xf32>, vector<16x128xf32> -> vector<16x128xf32>
    %5 = vector.broadcast %3 : vector<1x128xf32> to vector<16x128xf32>
    %6 = arith.addf %4, %5 : vector<16x128xf32>
    %cst_7 = arith.constant 0.000000e+00 : f32
    %7 = vector.broadcast %cst_7 : f32 to vector<2x32xf32>
    %cst_8 = arith.constant 0.000000e+00 : f32
    %8 = vector.broadcast %cst_8 : f32 to vector<2x32xf32>
    %9 = vector.extract_strided_slice %6 {offsets = [0, 0], sizes = [2, 128], strides = [1, 1]} : vector<16x128xf32> to vector<2x128xf32>
    %cst_9 = arith.constant dense<0.000000e+00> : vector<2x128xf32>
    %10 = tpu.matmul %7, %2, %cst_9 {dimension_numbers = #tpu.dot_dimension_numbers<[1], [0], [0], [1], [0, 0, 1, 1], [], []>} : vector<2x32xf32>, vector<32x128xf32>, vector<2x128xf32> -> vector<2x128xf32>
    %11 = arith.addf %9, %10 : vector<2x128xf32>
    %12 = arith.negf %11 : vector<2x128xf32>
    %13 = math.exp %12 : vector<2x128xf32>
    %cst_10 = arith.constant 1.000000e+00 : f32
    %14 = vector.broadcast %cst_10 : f32 to vector<2x128xf32>
    %15 = arith.addf %14, %13 : vector<2x128xf32>
    %16 = arith.divf %14, %15 : vector<2x128xf32>
    %17 = vector.extract_strided_slice %16 {offsets = [0, 0], sizes = [2, 32], strides = [1, 1]} : vector<2x128xf32> to vector<2x32xf32>
    %18 = vector.extract_strided_slice %16 {offsets = [0, 32], sizes = [2, 32], strides = [1, 1]} : vector<2x128xf32> to vector<2x32xf32>
    %19 = vector.extract_strided_slice %16 {offsets = [0, 64], sizes = [2, 32], strides = [1, 1]} : vector<2x128xf32> to vector<2x32xf32>
    %cst_11 = arith.constant 2.000000e+00 : f32
    %20 = vector.broadcast %cst_11 : f32 to vector<2x32xf32>
    %21 = arith.mulf %20, %19 : vector<2x32xf32>
    %cst_12 = arith.constant 1.000000e+00 : f32
    %22 = vector.broadcast %cst_12 : f32 to vector<2x32xf32>
    %23 = arith.subf %21, %22 : vector<2x32xf32>
    %24 = vector.extract_strided_slice %16 {offsets = [0, 96], sizes = [2, 32], strides = [1, 1]} : vector<2x128xf32> to vector<2x32xf32>
    %25 = arith.mulf %18, %8 : vector<2x32xf32>
    %26 = arith.mulf %17, %23 : vector<2x32xf32>
    %27 = arith.addf %25, %26 : vector<2x32xf32>
    %28 = math.tanh %27 : vector<2x32xf32>
    %29 = arith.mulf %24, %28 : vector<2x32xf32>
    %30 = vector.extract_strided_slice %6 {offsets = [2, 0], sizes = [2, 128], strides = [1, 1]} : vector<16x128xf32> to vector<2x128xf32>
    %cst_13 = arith.constant dense<0.000000e+00> : vector<2x128xf32>
    %31 = tpu.matmul %29, %2, %cst_13 {dimension_numbers = #tpu.dot_dimension_numbers<[1], [0], [0], [1], [0, 0, 1, 1], [], []>} : vector<2x32xf32>, vector<32x128xf32>, vector<2x128xf32> -> vector<2x128xf32>
    %32 = arith.addf %30, %31 : vector<2x128xf32>
    %33 = arith.negf %32 : vector<2x128xf32>
    %34 = math.exp %33 : vector<2x128xf32>
    %cst_14 = arith.constant 1.000000e+00 : f32
    %35 = vector.broadcast %cst_14 : f32 to vector<2x128xf32>
    %36 = arith.addf %35, %34 : vector<2x128xf32>
    %37 = arith.divf %35, %36 : vector<2x128xf32>
    %38 = vector.extract_strided_slice %37 {offsets = [0, 0], sizes = [2, 32], strides = [1, 1]} : vector<2x128xf32> to vector<2x32xf32>
    %39 = vector.extract_strided_slice %37 {offsets = [0, 32], sizes = [2, 32], strides = [1, 1]} : vector<2x128xf32> to vector<2x32xf32>
    %40 = vector.extract_strided_slice %37 {offsets = [0, 64], sizes = [2, 32], strides = [1, 1]} : vector<2x128xf32> to vector<2x32xf32>
    %cst_15 = arith.constant 2.000000e+00 : f32
    %41 = vector.broadcast %cst_15 : f32 to vector<2x32xf32>
    %42 = arith.mulf %41, %40 : vector<2x32xf32>
    %cst_16 = arith.constant 1.000000e+00 : f32
    %43 = vector.broadcast %cst_16 : f32 to vector<2x32xf32>
    %44 = arith.subf %42, %43 : vector<2x32xf32>
    %45 = vector.extract_strided_slice %37 {offsets = [0, 96], sizes = [2, 32], strides = [1, 1]} : vector<2x128xf32> to vector<2x32xf32>
    %46 = arith.mulf %39, %27 : vector<2x32xf32>
    %47 = arith.mulf %38, %44 : vector<2x32xf32>
    %48 = arith.addf %46, %47 : vector<2x32xf32>
    %49 = math.tanh %48 : vector<2x32xf32>
    %50 = arith.mulf %45, %49 : vector<2x32xf32>
    %51 = vector.extract_strided_slice %6 {offsets = [4, 0], sizes = [2, 128], strides = [1, 1]} : vector<16x128xf32> to vector<2x128xf32>
    %cst_17 = arith.constant dense<0.000000e+00> : vector<2x128xf32>
    %52 = tpu.matmul %50, %2, %cst_17 {dimension_numbers = #tpu.dot_dimension_numbers<[1], [0], [0], [1], [0, 0, 1, 1], [], []>} : vector<2x32xf32>, vector<32x128xf32>, vector<2x128xf32> -> vector<2x128xf32>
    %53 = arith.addf %51, %52 : vector<2x128xf32>
    %54 = arith.negf %53 : vector<2x128xf32>
    %55 = math.exp %54 : vector<2x128xf32>
    %cst_18 = arith.constant 1.000000e+00 : f32
    %56 = vector.broadcast %cst_18 : f32 to vector<2x128xf32>
    %57 = arith.addf %56, %55 : vector<2x128xf32>
    %58 = arith.divf %56, %57 : vector<2x128xf32>
    %59 = vector.extract_strided_slice %58 {offsets = [0, 0], sizes = [2, 32], strides = [1, 1]} : vector<2x128xf32> to vector<2x32xf32>
    %60 = vector.extract_strided_slice %58 {offsets = [0, 32], sizes = [2, 32], strides = [1, 1]} : vector<2x128xf32> to vector<2x32xf32>
    %61 = vector.extract_strided_slice %58 {offsets = [0, 64], sizes = [2, 32], strides = [1, 1]} : vector<2x128xf32> to vector<2x32xf32>
    %cst_19 = arith.constant 2.000000e+00 : f32
    %62 = vector.broadcast %cst_19 : f32 to vector<2x32xf32>
    %63 = arith.mulf %62, %61 : vector<2x32xf32>
    %cst_20 = arith.constant 1.000000e+00 : f32
    %64 = vector.broadcast %cst_20 : f32 to vector<2x32xf32>
    %65 = arith.subf %63, %64 : vector<2x32xf32>
    %66 = vector.extract_strided_slice %58 {offsets = [0, 96], sizes = [2, 32], strides = [1, 1]} : vector<2x128xf32> to vector<2x32xf32>
    %67 = arith.mulf %60, %48 : vector<2x32xf32>
    %68 = arith.mulf %59, %65 : vector<2x32xf32>
    %69 = arith.addf %67, %68 : vector<2x32xf32>
    %70 = math.tanh %69 : vector<2x32xf32>
    %71 = arith.mulf %66, %70 : vector<2x32xf32>
    %72 = vector.extract_strided_slice %6 {offsets = [6, 0], sizes = [2, 128], strides = [1, 1]} : vector<16x128xf32> to vector<2x128xf32>
    %cst_21 = arith.constant dense<0.000000e+00> : vector<2x128xf32>
    %73 = tpu.matmul %71, %2, %cst_21 {dimension_numbers = #tpu.dot_dimension_numbers<[1], [0], [0], [1], [0, 0, 1, 1], [], []>} : vector<2x32xf32>, vector<32x128xf32>, vector<2x128xf32> -> vector<2x128xf32>
    %74 = arith.addf %72, %73 : vector<2x128xf32>
    %75 = arith.negf %74 : vector<2x128xf32>
    %76 = math.exp %75 : vector<2x128xf32>
    %cst_22 = arith.constant 1.000000e+00 : f32
    %77 = vector.broadcast %cst_22 : f32 to vector<2x128xf32>
    %78 = arith.addf %77, %76 : vector<2x128xf32>
    %79 = arith.divf %77, %78 : vector<2x128xf32>
    %80 = vector.extract_strided_slice %79 {offsets = [0, 0], sizes = [2, 32], strides = [1, 1]} : vector<2x128xf32> to vector<2x32xf32>
    %81 = vector.extract_strided_slice %79 {offsets = [0, 32], sizes = [2, 32], strides = [1, 1]} : vector<2x128xf32> to vector<2x32xf32>
    %82 = vector.extract_strided_slice %79 {offsets = [0, 64], sizes = [2, 32], strides = [1, 1]} : vector<2x128xf32> to vector<2x32xf32>
    %cst_23 = arith.constant 2.000000e+00 : f32
    %83 = vector.broadcast %cst_23 : f32 to vector<2x32xf32>
    %84 = arith.mulf %83, %82 : vector<2x32xf32>
    %cst_24 = arith.constant 1.000000e+00 : f32
    %85 = vector.broadcast %cst_24 : f32 to vector<2x32xf32>
    %86 = arith.subf %84, %85 : vector<2x32xf32>
    %87 = vector.extract_strided_slice %79 {offsets = [0, 96], sizes = [2, 32], strides = [1, 1]} : vector<2x128xf32> to vector<2x32xf32>
    %88 = arith.mulf %81, %69 : vector<2x32xf32>
    %89 = arith.mulf %80, %86 : vector<2x32xf32>
    %90 = arith.addf %88, %89 : vector<2x32xf32>
    %91 = math.tanh %90 : vector<2x32xf32>
    %92 = arith.mulf %87, %91 : vector<2x32xf32>
    %93 = vector.extract_strided_slice %6 {offsets = [8, 0], sizes = [2, 128], strides = [1, 1]} : vector<16x128xf32> to vector<2x128xf32>
    %cst_25 = arith.constant dense<0.000000e+00> : vector<2x128xf32>
    %94 = tpu.matmul %92, %2, %cst_25 {dimension_numbers = #tpu.dot_dimension_numbers<[1], [0], [0], [1], [0, 0, 1, 1], [], []>} : vector<2x32xf32>, vector<32x128xf32>, vector<2x128xf32> -> vector<2x128xf32>
    %95 = arith.addf %93, %94 : vector<2x128xf32>
    %96 = arith.negf %95 : vector<2x128xf32>
    %97 = math.exp %96 : vector<2x128xf32>
    %cst_26 = arith.constant 1.000000e+00 : f32
    %98 = vector.broadcast %cst_26 : f32 to vector<2x128xf32>
    %99 = arith.addf %98, %97 : vector<2x128xf32>
    %100 = arith.divf %98, %99 : vector<2x128xf32>
    %101 = vector.extract_strided_slice %100 {offsets = [0, 0], sizes = [2, 32], strides = [1, 1]} : vector<2x128xf32> to vector<2x32xf32>
    %102 = vector.extract_strided_slice %100 {offsets = [0, 32], sizes = [2, 32], strides = [1, 1]} : vector<2x128xf32> to vector<2x32xf32>
    %103 = vector.extract_strided_slice %100 {offsets = [0, 64], sizes = [2, 32], strides = [1, 1]} : vector<2x128xf32> to vector<2x32xf32>
    %cst_27 = arith.constant 2.000000e+00 : f32
    %104 = vector.broadcast %cst_27 : f32 to vector<2x32xf32>
    %105 = arith.mulf %104, %103 : vector<2x32xf32>
    %cst_28 = arith.constant 1.000000e+00 : f32
    %106 = vector.broadcast %cst_28 : f32 to vector<2x32xf32>
    %107 = arith.subf %105, %106 : vector<2x32xf32>
    %108 = vector.extract_strided_slice %100 {offsets = [0, 96], sizes = [2, 32], strides = [1, 1]} : vector<2x128xf32> to vector<2x32xf32>
    %109 = arith.mulf %102, %90 : vector<2x32xf32>
    %110 = arith.mulf %101, %107 : vector<2x32xf32>
    %111 = arith.addf %109, %110 : vector<2x32xf32>
    %112 = math.tanh %111 : vector<2x32xf32>
    %113 = arith.mulf %108, %112 : vector<2x32xf32>
    %114 = vector.extract_strided_slice %6 {offsets = [10, 0], sizes = [2, 128], strides = [1, 1]} : vector<16x128xf32> to vector<2x128xf32>
    %cst_29 = arith.constant dense<0.000000e+00> : vector<2x128xf32>
    %115 = tpu.matmul %113, %2, %cst_29 {dimension_numbers = #tpu.dot_dimension_numbers<[1], [0], [0], [1], [0, 0, 1, 1], [], []>} : vector<2x32xf32>, vector<32x128xf32>, vector<2x128xf32> -> vector<2x128xf32>
    %116 = arith.addf %114, %115 : vector<2x128xf32>
    %117 = arith.negf %116 : vector<2x128xf32>
    %118 = math.exp %117 : vector<2x128xf32>
    %cst_30 = arith.constant 1.000000e+00 : f32
    %119 = vector.broadcast %cst_30 : f32 to vector<2x128xf32>
    %120 = arith.addf %119, %118 : vector<2x128xf32>
    %121 = arith.divf %119, %120 : vector<2x128xf32>
    %122 = vector.extract_strided_slice %121 {offsets = [0, 0], sizes = [2, 32], strides = [1, 1]} : vector<2x128xf32> to vector<2x32xf32>
    %123 = vector.extract_strided_slice %121 {offsets = [0, 32], sizes = [2, 32], strides = [1, 1]} : vector<2x128xf32> to vector<2x32xf32>
    %124 = vector.extract_strided_slice %121 {offsets = [0, 64], sizes = [2, 32], strides = [1, 1]} : vector<2x128xf32> to vector<2x32xf32>
    %cst_31 = arith.constant 2.000000e+00 : f32
    %125 = vector.broadcast %cst_31 : f32 to vector<2x32xf32>
    %126 = arith.mulf %125, %124 : vector<2x32xf32>
    %cst_32 = arith.constant 1.000000e+00 : f32
    %127 = vector.broadcast %cst_32 : f32 to vector<2x32xf32>
    %128 = arith.subf %126, %127 : vector<2x32xf32>
    %129 = vector.extract_strided_slice %121 {offsets = [0, 96], sizes = [2, 32], strides = [1, 1]} : vector<2x128xf32> to vector<2x32xf32>
    %130 = arith.mulf %123, %111 : vector<2x32xf32>
    %131 = arith.mulf %122, %128 : vector<2x32xf32>
    %132 = arith.addf %130, %131 : vector<2x32xf32>
    %133 = math.tanh %132 : vector<2x32xf32>
    %134 = arith.mulf %129, %133 : vector<2x32xf32>
    %135 = vector.extract_strided_slice %6 {offsets = [12, 0], sizes = [2, 128], strides = [1, 1]} : vector<16x128xf32> to vector<2x128xf32>
    %cst_33 = arith.constant dense<0.000000e+00> : vector<2x128xf32>
    %136 = tpu.matmul %134, %2, %cst_33 {dimension_numbers = #tpu.dot_dimension_numbers<[1], [0], [0], [1], [0, 0, 1, 1], [], []>} : vector<2x32xf32>, vector<32x128xf32>, vector<2x128xf32> -> vector<2x128xf32>
    %137 = arith.addf %135, %136 : vector<2x128xf32>
    %138 = arith.negf %137 : vector<2x128xf32>
    %139 = math.exp %138 : vector<2x128xf32>
    %cst_34 = arith.constant 1.000000e+00 : f32
    %140 = vector.broadcast %cst_34 : f32 to vector<2x128xf32>
    %141 = arith.addf %140, %139 : vector<2x128xf32>
    %142 = arith.divf %140, %141 : vector<2x128xf32>
    %143 = vector.extract_strided_slice %142 {offsets = [0, 0], sizes = [2, 32], strides = [1, 1]} : vector<2x128xf32> to vector<2x32xf32>
    %144 = vector.extract_strided_slice %142 {offsets = [0, 32], sizes = [2, 32], strides = [1, 1]} : vector<2x128xf32> to vector<2x32xf32>
    %145 = vector.extract_strided_slice %142 {offsets = [0, 64], sizes = [2, 32], strides = [1, 1]} : vector<2x128xf32> to vector<2x32xf32>
    %cst_35 = arith.constant 2.000000e+00 : f32
    %146 = vector.broadcast %cst_35 : f32 to vector<2x32xf32>
    %147 = arith.mulf %146, %145 : vector<2x32xf32>
    %cst_36 = arith.constant 1.000000e+00 : f32
    %148 = vector.broadcast %cst_36 : f32 to vector<2x32xf32>
    %149 = arith.subf %147, %148 : vector<2x32xf32>
    %150 = vector.extract_strided_slice %142 {offsets = [0, 96], sizes = [2, 32], strides = [1, 1]} : vector<2x128xf32> to vector<2x32xf32>
    %151 = arith.mulf %144, %132 : vector<2x32xf32>
    %152 = arith.mulf %143, %149 : vector<2x32xf32>
    %153 = arith.addf %151, %152 : vector<2x32xf32>
    %154 = math.tanh %153 : vector<2x32xf32>
    %155 = arith.mulf %150, %154 : vector<2x32xf32>
    %156 = vector.extract_strided_slice %6 {offsets = [14, 0], sizes = [2, 128], strides = [1, 1]} : vector<16x128xf32> to vector<2x128xf32>
    %cst_37 = arith.constant dense<0.000000e+00> : vector<2x128xf32>
    %157 = tpu.matmul %155, %2, %cst_37 {dimension_numbers = #tpu.dot_dimension_numbers<[1], [0], [0], [1], [0, 0, 1, 1], [], []>} : vector<2x32xf32>, vector<32x128xf32>, vector<2x128xf32> -> vector<2x128xf32>
    %158 = arith.addf %156, %157 : vector<2x128xf32>
    %159 = arith.negf %158 : vector<2x128xf32>
    %160 = math.exp %159 : vector<2x128xf32>
    %cst_38 = arith.constant 1.000000e+00 : f32
    %161 = vector.broadcast %cst_38 : f32 to vector<2x128xf32>
    %162 = arith.addf %161, %160 : vector<2x128xf32>
    %163 = arith.divf %161, %162 : vector<2x128xf32>
    %164 = vector.extract_strided_slice %163 {offsets = [0, 0], sizes = [2, 32], strides = [1, 1]} : vector<2x128xf32> to vector<2x32xf32>
    %165 = vector.extract_strided_slice %163 {offsets = [0, 32], sizes = [2, 32], strides = [1, 1]} : vector<2x128xf32> to vector<2x32xf32>
    %166 = vector.extract_strided_slice %163 {offsets = [0, 64], sizes = [2, 32], strides = [1, 1]} : vector<2x128xf32> to vector<2x32xf32>
    %cst_39 = arith.constant 2.000000e+00 : f32
    %167 = vector.broadcast %cst_39 : f32 to vector<2x32xf32>
    %168 = arith.mulf %167, %166 : vector<2x32xf32>
    %cst_40 = arith.constant 1.000000e+00 : f32
    %169 = vector.broadcast %cst_40 : f32 to vector<2x32xf32>
    %170 = arith.subf %168, %169 : vector<2x32xf32>
    %171 = vector.extract_strided_slice %163 {offsets = [0, 96], sizes = [2, 32], strides = [1, 1]} : vector<2x128xf32> to vector<2x32xf32>
    %172 = arith.mulf %165, %153 : vector<2x32xf32>
    %173 = arith.mulf %164, %170 : vector<2x32xf32>
    %174 = arith.addf %172, %173 : vector<2x32xf32>
    %175 = math.tanh %174 : vector<2x32xf32>
    %176 = arith.mulf %171, %175 : vector<2x32xf32>
    %177 = tpu.concatenate %29, %50, %71, %92, %113, %134, %155, %176 in 0 : vector<2x32xf32>, vector<2x32xf32>, vector<2x32xf32>, vector<2x32xf32>, vector<2x32xf32>, vector<2x32xf32>, vector<2x32xf32>, vector<2x32xf32> -> vector<16x32xf32>
    %c0_41 = arith.constant 0 : index
    %c0_42 = arith.constant 0 : index
    %178 = vector.load %arg4[%c0_41, %c0_42] : memref<32x128xf32, #tpu.memory_space<vmem>>, vector<32x128xf32>
    %c0_43 = arith.constant 0 : index
    %c0_44 = arith.constant 0 : index
    %179 = vector.load %arg5[%c0_43, %c0_44] : memref<32x128xf32, #tpu.memory_space<vmem>>, vector<32x128xf32>
    %c0_45 = arith.constant 0 : index
    %c0_46 = arith.constant 0 : index
    %180 = vector.load %arg6[%c0_45, %c0_46] : memref<1x128xf32, #tpu.memory_space<vmem>>, vector<1x128xf32>
    %cst_47 = arith.constant dense<0.000000e+00> : vector<16x128xf32>
    %181 = tpu.matmul %177, %178, %cst_47 {dimension_numbers = #tpu.dot_dimension_numbers<[1], [0], [0], [1], [0, 0, 1, 1], [], []>} : vector<16x32xf32>, vector<32x128xf32>, vector<16x128xf32> -> vector<16x128xf32>
    %182 = vector.broadcast %180 : vector<1x128xf32> to vector<16x128xf32>
    %183 = arith.addf %181, %182 : vector<16x128xf32>
    %cst_48 = arith.constant 0.000000e+00 : f32
    %184 = vector.broadcast %cst_48 : f32 to vector<2x32xf32>
    %cst_49 = arith.constant 0.000000e+00 : f32
    %185 = vector.broadcast %cst_49 : f32 to vector<2x32xf32>
    %186 = vector.extract_strided_slice %183 {offsets = [0, 0], sizes = [2, 128], strides = [1, 1]} : vector<16x128xf32> to vector<2x128xf32>
    %cst_50 = arith.constant dense<0.000000e+00> : vector<2x128xf32>
    %187 = tpu.matmul %184, %179, %cst_50 {dimension_numbers = #tpu.dot_dimension_numbers<[1], [0], [0], [1], [0, 0, 1, 1], [], []>} : vector<2x32xf32>, vector<32x128xf32>, vector<2x128xf32> -> vector<2x128xf32>
    %188 = arith.addf %186, %187 : vector<2x128xf32>
    %189 = arith.negf %188 : vector<2x128xf32>
    %190 = math.exp %189 : vector<2x128xf32>
    %cst_51 = arith.constant 1.000000e+00 : f32
    %191 = vector.broadcast %cst_51 : f32 to vector<2x128xf32>
    %192 = arith.addf %191, %190 : vector<2x128xf32>
    %193 = arith.divf %191, %192 : vector<2x128xf32>
    %194 = vector.extract_strided_slice %193 {offsets = [0, 0], sizes = [2, 32], strides = [1, 1]} : vector<2x128xf32> to vector<2x32xf32>
    %195 = vector.extract_strided_slice %193 {offsets = [0, 32], sizes = [2, 32], strides = [1, 1]} : vector<2x128xf32> to vector<2x32xf32>
    %196 = vector.extract_strided_slice %193 {offsets = [0, 64], sizes = [2, 32], strides = [1, 1]} : vector<2x128xf32> to vector<2x32xf32>
    %cst_52 = arith.constant 2.000000e+00 : f32
    %197 = vector.broadcast %cst_52 : f32 to vector<2x32xf32>
    %198 = arith.mulf %197, %196 : vector<2x32xf32>
    %cst_53 = arith.constant 1.000000e+00 : f32
    %199 = vector.broadcast %cst_53 : f32 to vector<2x32xf32>
    %200 = arith.subf %198, %199 : vector<2x32xf32>
    %201 = vector.extract_strided_slice %193 {offsets = [0, 96], sizes = [2, 32], strides = [1, 1]} : vector<2x128xf32> to vector<2x32xf32>
    %202 = arith.mulf %195, %185 : vector<2x32xf32>
    %203 = arith.mulf %194, %200 : vector<2x32xf32>
    %204 = arith.addf %202, %203 : vector<2x32xf32>
    %205 = math.tanh %204 : vector<2x32xf32>
    %206 = arith.mulf %201, %205 : vector<2x32xf32>
    %207 = vector.extract_strided_slice %183 {offsets = [2, 0], sizes = [2, 128], strides = [1, 1]} : vector<16x128xf32> to vector<2x128xf32>
    %cst_54 = arith.constant dense<0.000000e+00> : vector<2x128xf32>
    %208 = tpu.matmul %206, %179, %cst_54 {dimension_numbers = #tpu.dot_dimension_numbers<[1], [0], [0], [1], [0, 0, 1, 1], [], []>} : vector<2x32xf32>, vector<32x128xf32>, vector<2x128xf32> -> vector<2x128xf32>
    %209 = arith.addf %207, %208 : vector<2x128xf32>
    %210 = arith.negf %209 : vector<2x128xf32>
    %211 = math.exp %210 : vector<2x128xf32>
    %cst_55 = arith.constant 1.000000e+00 : f32
    %212 = vector.broadcast %cst_55 : f32 to vector<2x128xf32>
    %213 = arith.addf %212, %211 : vector<2x128xf32>
    %214 = arith.divf %212, %213 : vector<2x128xf32>
    %215 = vector.extract_strided_slice %214 {offsets = [0, 0], sizes = [2, 32], strides = [1, 1]} : vector<2x128xf32> to vector<2x32xf32>
    %216 = vector.extract_strided_slice %214 {offsets = [0, 32], sizes = [2, 32], strides = [1, 1]} : vector<2x128xf32> to vector<2x32xf32>
    %217 = vector.extract_strided_slice %214 {offsets = [0, 64], sizes = [2, 32], strides = [1, 1]} : vector<2x128xf32> to vector<2x32xf32>
    %cst_56 = arith.constant 2.000000e+00 : f32
    %218 = vector.broadcast %cst_56 : f32 to vector<2x32xf32>
    %219 = arith.mulf %218, %217 : vector<2x32xf32>
    %cst_57 = arith.constant 1.000000e+00 : f32
    %220 = vector.broadcast %cst_57 : f32 to vector<2x32xf32>
    %221 = arith.subf %219, %220 : vector<2x32xf32>
    %222 = vector.extract_strided_slice %214 {offsets = [0, 96], sizes = [2, 32], strides = [1, 1]} : vector<2x128xf32> to vector<2x32xf32>
    %223 = arith.mulf %216, %204 : vector<2x32xf32>
    %224 = arith.mulf %215, %221 : vector<2x32xf32>
    %225 = arith.addf %223, %224 : vector<2x32xf32>
    %226 = math.tanh %225 : vector<2x32xf32>
    %227 = arith.mulf %222, %226 : vector<2x32xf32>
    %228 = vector.extract_strided_slice %183 {offsets = [4, 0], sizes = [2, 128], strides = [1, 1]} : vector<16x128xf32> to vector<2x128xf32>
    %cst_58 = arith.constant dense<0.000000e+00> : vector<2x128xf32>
    %229 = tpu.matmul %227, %179, %cst_58 {dimension_numbers = #tpu.dot_dimension_numbers<[1], [0], [0], [1], [0, 0, 1, 1], [], []>} : vector<2x32xf32>, vector<32x128xf32>, vector<2x128xf32> -> vector<2x128xf32>
    %230 = arith.addf %228, %229 : vector<2x128xf32>
    %231 = arith.negf %230 : vector<2x128xf32>
    %232 = math.exp %231 : vector<2x128xf32>
    %cst_59 = arith.constant 1.000000e+00 : f32
    %233 = vector.broadcast %cst_59 : f32 to vector<2x128xf32>
    %234 = arith.addf %233, %232 : vector<2x128xf32>
    %235 = arith.divf %233, %234 : vector<2x128xf32>
    %236 = vector.extract_strided_slice %235 {offsets = [0, 0], sizes = [2, 32], strides = [1, 1]} : vector<2x128xf32> to vector<2x32xf32>
    %237 = vector.extract_strided_slice %235 {offsets = [0, 32], sizes = [2, 32], strides = [1, 1]} : vector<2x128xf32> to vector<2x32xf32>
    %238 = vector.extract_strided_slice %235 {offsets = [0, 64], sizes = [2, 32], strides = [1, 1]} : vector<2x128xf32> to vector<2x32xf32>
    %cst_60 = arith.constant 2.000000e+00 : f32
    %239 = vector.broadcast %cst_60 : f32 to vector<2x32xf32>
    %240 = arith.mulf %239, %238 : vector<2x32xf32>
    %cst_61 = arith.constant 1.000000e+00 : f32
    %241 = vector.broadcast %cst_61 : f32 to vector<2x32xf32>
    %242 = arith.subf %240, %241 : vector<2x32xf32>
    %243 = vector.extract_strided_slice %235 {offsets = [0, 96], sizes = [2, 32], strides = [1, 1]} : vector<2x128xf32> to vector<2x32xf32>
    %244 = arith.mulf %237, %225 : vector<2x32xf32>
    %245 = arith.mulf %236, %242 : vector<2x32xf32>
    %246 = arith.addf %244, %245 : vector<2x32xf32>
    %247 = math.tanh %246 : vector<2x32xf32>
    %248 = arith.mulf %243, %247 : vector<2x32xf32>
    %249 = vector.extract_strided_slice %183 {offsets = [6, 0], sizes = [2, 128], strides = [1, 1]} : vector<16x128xf32> to vector<2x128xf32>
    %cst_62 = arith.constant dense<0.000000e+00> : vector<2x128xf32>
    %250 = tpu.matmul %248, %179, %cst_62 {dimension_numbers = #tpu.dot_dimension_numbers<[1], [0], [0], [1], [0, 0, 1, 1], [], []>} : vector<2x32xf32>, vector<32x128xf32>, vector<2x128xf32> -> vector<2x128xf32>
    %251 = arith.addf %249, %250 : vector<2x128xf32>
    %252 = arith.negf %251 : vector<2x128xf32>
    %253 = math.exp %252 : vector<2x128xf32>
    %cst_63 = arith.constant 1.000000e+00 : f32
    %254 = vector.broadcast %cst_63 : f32 to vector<2x128xf32>
    %255 = arith.addf %254, %253 : vector<2x128xf32>
    %256 = arith.divf %254, %255 : vector<2x128xf32>
    %257 = vector.extract_strided_slice %256 {offsets = [0, 0], sizes = [2, 32], strides = [1, 1]} : vector<2x128xf32> to vector<2x32xf32>
    %258 = vector.extract_strided_slice %256 {offsets = [0, 32], sizes = [2, 32], strides = [1, 1]} : vector<2x128xf32> to vector<2x32xf32>
    %259 = vector.extract_strided_slice %256 {offsets = [0, 64], sizes = [2, 32], strides = [1, 1]} : vector<2x128xf32> to vector<2x32xf32>
    %cst_64 = arith.constant 2.000000e+00 : f32
    %260 = vector.broadcast %cst_64 : f32 to vector<2x32xf32>
    %261 = arith.mulf %260, %259 : vector<2x32xf32>
    %cst_65 = arith.constant 1.000000e+00 : f32
    %262 = vector.broadcast %cst_65 : f32 to vector<2x32xf32>
    %263 = arith.subf %261, %262 : vector<2x32xf32>
    %264 = vector.extract_strided_slice %256 {offsets = [0, 96], sizes = [2, 32], strides = [1, 1]} : vector<2x128xf32> to vector<2x32xf32>
    %265 = arith.mulf %258, %246 : vector<2x32xf32>
    %266 = arith.mulf %257, %263 : vector<2x32xf32>
    %267 = arith.addf %265, %266 : vector<2x32xf32>
    %268 = math.tanh %267 : vector<2x32xf32>
    %269 = arith.mulf %264, %268 : vector<2x32xf32>
    %270 = vector.extract_strided_slice %183 {offsets = [8, 0], sizes = [2, 128], strides = [1, 1]} : vector<16x128xf32> to vector<2x128xf32>
    %cst_66 = arith.constant dense<0.000000e+00> : vector<2x128xf32>
    %271 = tpu.matmul %269, %179, %cst_66 {dimension_numbers = #tpu.dot_dimension_numbers<[1], [0], [0], [1], [0, 0, 1, 1], [], []>} : vector<2x32xf32>, vector<32x128xf32>, vector<2x128xf32> -> vector<2x128xf32>
    %272 = arith.addf %270, %271 : vector<2x128xf32>
    %273 = arith.negf %272 : vector<2x128xf32>
    %274 = math.exp %273 : vector<2x128xf32>
    %cst_67 = arith.constant 1.000000e+00 : f32
    %275 = vector.broadcast %cst_67 : f32 to vector<2x128xf32>
    %276 = arith.addf %275, %274 : vector<2x128xf32>
    %277 = arith.divf %275, %276 : vector<2x128xf32>
    %278 = vector.extract_strided_slice %277 {offsets = [0, 0], sizes = [2, 32], strides = [1, 1]} : vector<2x128xf32> to vector<2x32xf32>
    %279 = vector.extract_strided_slice %277 {offsets = [0, 32], sizes = [2, 32], strides = [1, 1]} : vector<2x128xf32> to vector<2x32xf32>
    %280 = vector.extract_strided_slice %277 {offsets = [0, 64], sizes = [2, 32], strides = [1, 1]} : vector<2x128xf32> to vector<2x32xf32>
    %cst_68 = arith.constant 2.000000e+00 : f32
    %281 = vector.broadcast %cst_68 : f32 to vector<2x32xf32>
    %282 = arith.mulf %281, %280 : vector<2x32xf32>
    %cst_69 = arith.constant 1.000000e+00 : f32
    %283 = vector.broadcast %cst_69 : f32 to vector<2x32xf32>
    %284 = arith.subf %282, %283 : vector<2x32xf32>
    %285 = vector.extract_strided_slice %277 {offsets = [0, 96], sizes = [2, 32], strides = [1, 1]} : vector<2x128xf32> to vector<2x32xf32>
    %286 = arith.mulf %279, %267 : vector<2x32xf32>
    %287 = arith.mulf %278, %284 : vector<2x32xf32>
    %288 = arith.addf %286, %287 : vector<2x32xf32>
    %289 = math.tanh %288 : vector<2x32xf32>
    %290 = arith.mulf %285, %289 : vector<2x32xf32>
    %291 = vector.extract_strided_slice %183 {offsets = [10, 0], sizes = [2, 128], strides = [1, 1]} : vector<16x128xf32> to vector<2x128xf32>
    %cst_70 = arith.constant dense<0.000000e+00> : vector<2x128xf32>
    %292 = tpu.matmul %290, %179, %cst_70 {dimension_numbers = #tpu.dot_dimension_numbers<[1], [0], [0], [1], [0, 0, 1, 1], [], []>} : vector<2x32xf32>, vector<32x128xf32>, vector<2x128xf32> -> vector<2x128xf32>
    %293 = arith.addf %291, %292 : vector<2x128xf32>
    %294 = arith.negf %293 : vector<2x128xf32>
    %295 = math.exp %294 : vector<2x128xf32>
    %cst_71 = arith.constant 1.000000e+00 : f32
    %296 = vector.broadcast %cst_71 : f32 to vector<2x128xf32>
    %297 = arith.addf %296, %295 : vector<2x128xf32>
    %298 = arith.divf %296, %297 : vector<2x128xf32>
    %299 = vector.extract_strided_slice %298 {offsets = [0, 0], sizes = [2, 32], strides = [1, 1]} : vector<2x128xf32> to vector<2x32xf32>
    %300 = vector.extract_strided_slice %298 {offsets = [0, 32], sizes = [2, 32], strides = [1, 1]} : vector<2x128xf32> to vector<2x32xf32>
    %301 = vector.extract_strided_slice %298 {offsets = [0, 64], sizes = [2, 32], strides = [1, 1]} : vector<2x128xf32> to vector<2x32xf32>
    %cst_72 = arith.constant 2.000000e+00 : f32
    %302 = vector.broadcast %cst_72 : f32 to vector<2x32xf32>
    %303 = arith.mulf %302, %301 : vector<2x32xf32>
    %cst_73 = arith.constant 1.000000e+00 : f32
    %304 = vector.broadcast %cst_73 : f32 to vector<2x32xf32>
    %305 = arith.subf %303, %304 : vector<2x32xf32>
    %306 = vector.extract_strided_slice %298 {offsets = [0, 96], sizes = [2, 32], strides = [1, 1]} : vector<2x128xf32> to vector<2x32xf32>
    %307 = arith.mulf %300, %288 : vector<2x32xf32>
    %308 = arith.mulf %299, %305 : vector<2x32xf32>
    %309 = arith.addf %307, %308 : vector<2x32xf32>
    %310 = math.tanh %309 : vector<2x32xf32>
    %311 = arith.mulf %306, %310 : vector<2x32xf32>
    %312 = vector.extract_strided_slice %183 {offsets = [12, 0], sizes = [2, 128], strides = [1, 1]} : vector<16x128xf32> to vector<2x128xf32>
    %cst_74 = arith.constant dense<0.000000e+00> : vector<2x128xf32>
    %313 = tpu.matmul %311, %179, %cst_74 {dimension_numbers = #tpu.dot_dimension_numbers<[1], [0], [0], [1], [0, 0, 1, 1], [], []>} : vector<2x32xf32>, vector<32x128xf32>, vector<2x128xf32> -> vector<2x128xf32>
    %314 = arith.addf %312, %313 : vector<2x128xf32>
    %315 = arith.negf %314 : vector<2x128xf32>
    %316 = math.exp %315 : vector<2x128xf32>
    %cst_75 = arith.constant 1.000000e+00 : f32
    %317 = vector.broadcast %cst_75 : f32 to vector<2x128xf32>
    %318 = arith.addf %317, %316 : vector<2x128xf32>
    %319 = arith.divf %317, %318 : vector<2x128xf32>
    %320 = vector.extract_strided_slice %319 {offsets = [0, 0], sizes = [2, 32], strides = [1, 1]} : vector<2x128xf32> to vector<2x32xf32>
    %321 = vector.extract_strided_slice %319 {offsets = [0, 32], sizes = [2, 32], strides = [1, 1]} : vector<2x128xf32> to vector<2x32xf32>
    %322 = vector.extract_strided_slice %319 {offsets = [0, 64], sizes = [2, 32], strides = [1, 1]} : vector<2x128xf32> to vector<2x32xf32>
    %cst_76 = arith.constant 2.000000e+00 : f32
    %323 = vector.broadcast %cst_76 : f32 to vector<2x32xf32>
    %324 = arith.mulf %323, %322 : vector<2x32xf32>
    %cst_77 = arith.constant 1.000000e+00 : f32
    %325 = vector.broadcast %cst_77 : f32 to vector<2x32xf32>
    %326 = arith.subf %324, %325 : vector<2x32xf32>
    %327 = vector.extract_strided_slice %319 {offsets = [0, 96], sizes = [2, 32], strides = [1, 1]} : vector<2x128xf32> to vector<2x32xf32>
    %328 = arith.mulf %321, %309 : vector<2x32xf32>
    %329 = arith.mulf %320, %326 : vector<2x32xf32>
    %330 = arith.addf %328, %329 : vector<2x32xf32>
    %331 = math.tanh %330 : vector<2x32xf32>
    %332 = arith.mulf %327, %331 : vector<2x32xf32>
    %333 = vector.extract_strided_slice %183 {offsets = [14, 0], sizes = [2, 128], strides = [1, 1]} : vector<16x128xf32> to vector<2x128xf32>
    %cst_78 = arith.constant dense<0.000000e+00> : vector<2x128xf32>
    %334 = tpu.matmul %332, %179, %cst_78 {dimension_numbers = #tpu.dot_dimension_numbers<[1], [0], [0], [1], [0, 0, 1, 1], [], []>} : vector<2x32xf32>, vector<32x128xf32>, vector<2x128xf32> -> vector<2x128xf32>
    %335 = arith.addf %333, %334 : vector<2x128xf32>
    %336 = arith.negf %335 : vector<2x128xf32>
    %337 = math.exp %336 : vector<2x128xf32>
    %cst_79 = arith.constant 1.000000e+00 : f32
    %338 = vector.broadcast %cst_79 : f32 to vector<2x128xf32>
    %339 = arith.addf %338, %337 : vector<2x128xf32>
    %340 = arith.divf %338, %339 : vector<2x128xf32>
    %341 = vector.extract_strided_slice %340 {offsets = [0, 0], sizes = [2, 32], strides = [1, 1]} : vector<2x128xf32> to vector<2x32xf32>
    %342 = vector.extract_strided_slice %340 {offsets = [0, 32], sizes = [2, 32], strides = [1, 1]} : vector<2x128xf32> to vector<2x32xf32>
    %343 = vector.extract_strided_slice %340 {offsets = [0, 64], sizes = [2, 32], strides = [1, 1]} : vector<2x128xf32> to vector<2x32xf32>
    %cst_80 = arith.constant 2.000000e+00 : f32
    %344 = vector.broadcast %cst_80 : f32 to vector<2x32xf32>
    %345 = arith.mulf %344, %343 : vector<2x32xf32>
    %cst_81 = arith.constant 1.000000e+00 : f32
    %346 = vector.broadcast %cst_81 : f32 to vector<2x32xf32>
    %347 = arith.subf %345, %346 : vector<2x32xf32>
    %348 = vector.extract_strided_slice %340 {offsets = [0, 96], sizes = [2, 32], strides = [1, 1]} : vector<2x128xf32> to vector<2x32xf32>
    %349 = arith.mulf %342, %330 : vector<2x32xf32>
    %350 = arith.mulf %341, %347 : vector<2x32xf32>
    %351 = arith.addf %349, %350 : vector<2x32xf32>
    %352 = math.tanh %351 : vector<2x32xf32>
    %353 = arith.mulf %348, %352 : vector<2x32xf32>
    %c0_82 = arith.constant 0 : index
    %c0_83 = arith.constant 0 : index
    %354 = vector.load %arg7[%c0_82, %c0_83] : memref<32x128xf32, #tpu.memory_space<vmem>>, vector<32x128xf32>
    %c0_84 = arith.constant 0 : index
    %c0_85 = arith.constant 0 : index
    %355 = vector.load %arg8[%c0_84, %c0_85] : memref<1x128xf32, #tpu.memory_space<vmem>>, vector<1x128xf32>
    %cst_86 = arith.constant dense<0.000000e+00> : vector<2x128xf32>
    %356 = tpu.matmul %353, %354, %cst_86 {dimension_numbers = #tpu.dot_dimension_numbers<[1], [0], [0], [1], [0, 0, 1, 1], [], []>} : vector<2x32xf32>, vector<32x128xf32>, vector<2x128xf32> -> vector<2x128xf32>
    %357 = vector.broadcast %355 : vector<1x128xf32> to vector<2x128xf32>
    %358 = arith.addf %356, %357 : vector<2x128xf32>
    %c0_87 = arith.constant 0 : index
    %c0_88 = arith.constant 0 : index
    %359 = vector.load %arg9[%c0_87, %c0_88] : memref<2x128xf32, #tpu.memory_space<vmem>>, vector<2x128xf32>
    tpu.vector_store %arg9[%c0_87, %c0_88], %358 {strides = array<i32>} : memref<2x128xf32, #tpu.memory_space<vmem>>, vector<2x128xf32>,
    return
  }
}

</mosaic_0001>

<bundles_post_ra>
// kernel: network_forward.1
= control target key start
LH: loop header
LB: loop body
LE: loop exit
PB: predicated region body
PF: predicated region fallthrough
CT: control target
= control target key end

     0   :  { %14 = vsyncpa [#allocation3], 0  ;;  %s3091_s0 = inlined_call_operand.vmem [shape: f32[16,16], index: 0, kind: input, shape index: {}]   ;;  %s3092_s1 = inlined_call_operand.hbm [shape: f32[16,128], index: 1, kind: input, shape index: {}]   ;;  %s3093_s2 = inlined_call_operand.vmem [shape: f32[32,128], index: 2, kind: input, shape index: {}]   ;;  %s3094_s3 = inlined_call_operand.vmem [shape: f32[1,128], index: 3, kind: input, shape index: {}]   ;;  %s3095_s4 = inlined_call_operand.hbm [shape: f32[32,128], index: 4, kind: input, shape index: {}]   ;;  %s3096_s5 = inlined_call_operand.hbm [shape: f32[32,128], index: 5, kind: input, shape index: {}]   ;;  %s3097_s6 = inlined_call_operand.vmem [shape: f32[1,128], index: 6, kind: input, shape index: {}]   ;;  %s3098_s7 = inlined_call_operand.hbm [shape: f32[32,128], index: 7, kind: input, shape index: {}]   ;;  %s3099_s8 = inlined_call_operand.vmem [shape: f32[1,128], index: 8, kind: input, shape index: {}]   ;;  %s3100_s9 = inlined_call_operand.hbm [shape: f32[2,128], index: 9, kind: output, shape index: {}]  }
   0x1   :  { %15 = vsyncpa [#allocation6], 0 }
   0x2   :  { %16 = vsyncpa [#allocation9], 0 }
   0x3   :  { %17 = vsyncpa [#allocation4], 0  ;;  %s2666_s30 = smov [#allocation5]   ;;  %s2667_s11 = smov [#allocation2]  }
   0x4   :  { %s41_s10 = sshll.u32 %s2666_s30, 4  ;;  %s25_s12 = sshll.u32 %s2667_s11, 4  ;;  %s42_s10 = int_to_ptr.vmem [resolvable:$true] %s41_s10  ;;  %s26_s12 = int_to_ptr.vmem [resolvable:$true] %s25_s12 }
   0x5   :  { %s2566_s13 = scalar_lea.vmem %s42_s10, 512  ;;  %p2571_p1 = scmp.lt.s32.totalorder %s42_s10, %s42_s10 }
   0x6   :  { %p2567_p0 = scmp.ne.s32.totalorder %s42_s10, %s2566_s13  ;;  %p2572_p2 = scmp.lt.s32.totalorder %s2566_s13, %s2566_s13 }
   0x8   :  { %p2573_p3 = por %p2572_p2, %p2571_p1 }
   0xa   :  { %p2574_p4 = pnand %p2573_p3, %p2567_p0 }
   0xc   :  { %2577 = shalt.err (!%p2574_p4)
}
   0xd   :  { %s2668_s14 = smov 128   ;;  %s2669_s15 = smov 8  }
   0xe   :  { %47 = dma.hbm_to_vmem [thread:$0]  %s3095_s4, 512, %s42_s10, [#allocation6], %s2668_s14, %s2668_s14, %s2669_s15  }
   0xf   :  { %s2586_s18 = scalar_lea.vmem %s26_s12, 256  ;;  %p2591_p6 = scmp.lt.s32.totalorder %s26_s12, %s26_s12 }
  0x10   :  { %p2587_p5 = scmp.ne.s32.totalorder %s26_s12, %s2586_s18  ;;  %p2592_p7 = scmp.lt.s32.totalorder %s2586_s18, %s2586_s18 }
  0x12   :  { %p2593_p8 = por %p2592_p7, %p2591_p6 }
  0x14   :  { %p2594_p9 = pnand %p2593_p8, %p2587_p5 }
  0x16   :  { %2597 = shalt.err (!%p2594_p9)
}
  0x17   :  { %31 = dma.hbm_to_vmem [thread:$0]  %s3092_s1, 256, %s26_s12, [#allocation3], %s2668_s14, %s2668_s14, %s2669_s15  }
  0x18   :  { %s2670_s21 = smov [#allocation7]   ;;  %s2671_s23 = smov [#allocation8]  }
  0x19   :  { %s53_s22 = sshll.u32 %s2670_s21, 4  ;;  %s67_s24 = sshll.u32 %s2671_s23, 4  ;;  %s54_s22 = int_to_ptr.vmem [resolvable:$true] %s53_s22  ;;  %s68_s24 = int_to_ptr.vmem [resolvable:$true] %s67_s24 }
  0x1a   :  { %s2606_s4 = scalar_lea.vmem %s54_s22, 512  ;;  %p2611_p11 = scmp.lt.s32.totalorder %s54_s22, %s54_s22 }
  0x1b   :  { %p2607_p10 = scmp.ne.s32.totalorder %s54_s22, %s2606_s4  ;;  %p2612_p12 = scmp.lt.s32.totalorder %s2606_s4, %s2606_s4 }
  0x1d   :  { %p2613_p13 = por %p2612_p12, %p2611_p11 }
  0x1f   :  { %p2614_p0 = pnand %p2613_p13, %p2607_p10 }
  0x21   :  { %2617 = shalt.err (!%p2614_p0)
}
  0x22   :  { %59 = dma.hbm_to_vmem [thread:$0]  %s3096_s5, 512, %s54_s22, [#allocation6], %s2668_s14, %s2668_s14, %s2669_s15  }
  0x23   :  { %s2626_s1 = scalar_lea.vmem %s68_s24, 512  ;;  %p2631_p2 = scmp.lt.s32.totalorder %s68_s24, %s68_s24 }
  0x24   :  { %p2627_p1 = scmp.ne.s32.totalorder %s68_s24, %s2626_s1  ;;  %p2632_p3 = scmp.lt.s32.totalorder %s2626_s1, %s2626_s1 }
  0x26   :  { %p2633_p4 = por %p2632_p3, %p2631_p2 }
  0x28   :  { %p2634_p5 = pnand %p2633_p4, %p2627_p1 }
  0x2a   :  { %2637 = shalt.err (!%p2634_p5)
}
  0x2b   :  { %73 = dma.hbm_to_vmem [thread:$0]  %s3098_s7, 512, %s68_s24, [#allocation9], %s2668_s14, %s2668_s14, %s2669_s15  }
  0x2c   :  { %2658 = dma.done.wait [#allocation3], 256  }
  0x2d   :  { %2659 = vsyncadd [#allocation3], 4294967040 }
  0x2e   :  { %2660 = dma.done.wait [#allocation6], 1024  }
  0x2f   :  { %2661 = vsyncadd [#allocation6], 4294966272 }
  0x30   :  { %2662 = dma.done.wait [#allocation9], 512  }
  0x31   :  { %2663 = vsyncadd [#allocation9], 4294966784  ;;  %v2672_v0 = vmov 0.0   ;;  %vm2673_vm0 = vmmov 0   ;;  %v91_v1 = vld [vmem:[#allocation2 + $0x8] sm:$0xff]  ;;  %v2757_v2 = vld [vmem:[%s3093_s2 + $0x18] sm:$0xff] }
  0x32   :  { %2253 = vmatprep.subr.mxu1 %v2672_v0  ;;  %2261 = vmatprep.mubr.msk.f32.mxu1 %vm2673_vm0, %v2672_v0  ;;  %v90_v3 = vld [vmem:[#allocation2] sm:$0xff]  ;;  %v2763_v4 = vld [vmem:[%s3093_s2 + $0x10] sm:$0xff]  ;;  %vm103_vm1 = vcmask 130048   ;;  %v89_v6 = vld [vmem:[%s3091_s0 + $0x8] sm:$0xff]  ;;  %s2674_s18 = smov 64   ;;  %vm185_vm2 = vcmask 261120  }
  0x33   :  { %2246 = vmatprep.subr.mxu0 %v91_v1  ;;  %2254 = vmatpush3.msra.mxu1 %v2757_v2  ;;  %v88_v5 = vld [vmem:[%s3091_s0] sm:$0xff]  ;;  %v2776_v7 = vld [vmem:[%s3093_s2 + $0x8] sm:$0xff]  ;;  %vm1036_vm3 = vcmask 1041408   ;;  %vm1038_vm4 = vcmask 1043456   ;;  %vm1040_vm5 = vcmask 1045504   ;;  %s2676_s22 = smov [#allocation10]  }
  0x34   :  { %2247 = vmatpush3.msra.mxu0 %v91_v1  ;;  %2255 = vmatprep.subr.mxu1 %v2672_v0  ;;  %v2782_v8 = vld [vmem:[%s3093_s2] sm:$0xff]  ;;  %s2086_s23 = sshll.u32 %s2676_s22, 4  ;;  %s2087_s23 = int_to_ptr.vmem [resolvable:$true] %s2086_s23 }
  0x35   :  { %2248 = vmatprep.subr.mxu0 %v90_v3  ;;  %2256 = vmatpush3.msra.mxu1 %v2763_v4  ;;  %v2097_v9 = vld [vmem:[%s3094_s3] ss:$0 sm:$0xff]  ;;  %s2675_s3 = smov 32   ;;  %s2638_s24 = scalar_lea.vmem %s2087_s23, 32 }
  0x36   :  { %2249 = vmatpush3.msra.mxu0 %v90_v3  ;;  %2250 = vmatprep.mubr.msk.f32.mxu0 %vm103_vm1, %v88_v5  ;;  %p2639_p6 = scmp.ne.s32.totalorder %s2087_s23, %s2638_s24  ;;  %p2643_p7 = scmp.lt.s32.totalorder %s2087_s23, %s2087_s23 }
  0x37   :  { %2257 = vmatprep.subr.mxu1 %v2672_v0  ;;  %2251 = vmatmul.mubr.msk.f32.vlgmr.msra.gmra.mxu0 %vm103_vm1, %v89_v6  ;;  %p2644_p8 = scmp.lt.s32.totalorder %s2638_s24, %s2638_s24 }
  0x38   :  { %2258 = vmatpush3.msra.mxu1 %v2776_v7  ;;  %2264 = vmatprep.subr.mxu0 %v2672_v0 }
  0x39   :  { %2259 = vmatprep.subr.mxu1 %v2672_v0  ;;  %2265 = vmatpush3.msra.mxu0 %v2757_v2  ;;  %p2645_p9 = por %p2644_p8, %p2643_p7 }
  0x3a   :  { %2260 = vmatpush3.msra.mxu1 %v2782_v8  ;;  %2266 = vmatprep.subr.mxu0 %v2672_v0 }
  0x3b   :  { %2262 = vmatmul.mubr.f32.vlgmr.msra.gmra.mxu1 %v2672_v0  ;;  %2267 = vmatpush3.msra.mxu0 %v2763_v4  ;;  %p2646_p10 = pnand %p2645_p9, %p2639_p6 }
  0x3c   :  { %2268 = vmatprep.subr.mxu0 %v2672_v0  ;;  %2272 = vmatprep.mubr.msk.f32.mxu0 %vm2673_vm0, %v2672_v0 }
  0x3d   :  { %2269 = vmatpush3.msra.mxu0 %v2776_v7  ;;  %2275 = vmatprep.subr.mxu1 %v2672_v0 }
  0x3e   :  { %2270 = vmatprep.subr.mxu0 %v2672_v0  ;;  %2276 = vmatpush3.msra.mxu1 %v2757_v2 }
  0x3f   :  { %2271 = vmatpush3.msra.mxu0 %v2782_v8  ;;  %2277 = vmatprep.subr.mxu1 %v2672_v0 }
  0x40   :  { %2278 = vmatpush3.msra.mxu1 %v2763_v4  ;;  %2283 = vmatprep.mubr.msk.f32.mxu1 %vm2673_vm0, %v2672_v0 }
  0x41   :  { %2279 = vmatprep.subr.mxu1 %v2672_v0  ;;  %2286 = vmatprep.subr.mxu0 %v2672_v0 }
  0x42   :  { %2280 = vmatpush3.msra.mxu1 %v2776_v7 }
  0x43   :  { %2281 = vmatprep.subr.mxu1 %v2672_v0 }
  0x44   :  { %2282 = vmatpush3.msra.mxu1 %v2782_v8 }
  0x45   :  { %2297 = vmatprep.subr.mxu1 %v2672_v0 }
  0xf7   :  { %v2252_v10 = vpop.f32.mrf.mxu0 }
  0xf8   :  { %v2813_v11 = vadd.f32 %v2252_v10, %v2097_v9 }
  0xf9   :  { %v176_v12 = vpop.f32.mrf.mxu0 }
  0xfa   :  { %v2815_v13 = vadd.f32 %v2097_v9, %v176_v12 }
  0xfb   :  { %v255_v14 = vpop.f32.mrf.mxu1 }
  0xfc   :  { %v259_v15 = vadd.f32 %v255_v14, %v2815_v13 }
  0xfd   :  { %v2263_v16 = vpop.f32.mrf.mxu1 }
  0xfe   :  { %v2100_v17 = vmul.f32 -1.442695, %v259_v15 }
 0x100   :  { %2462 = vpow2.f32 %v2100_v17 }
 0x10d   :  { %v2463_v18 = vpop.eup %2462 }
 0x10e   :  { %v263_v19 = vadd.f32 1.0, %v2463_v18 }
 0x110   :  { %2464 = vrcp.f32 %v263_v19 }
 0x11d   :  { %v2465_v20 = vpop.eup %2464 }
 0x11e   :  { %v266_v21 = vmul.f32 2.0, %v2465_v20  ;;  %v268_v25 = vmul.f32 0.0, %v2465_v20 }
 0x120   :  { %v2101_v22 = vadd.f32 -1.0, %v266_v21 }
 0x122   :  { %270 = vrot.lane.b32.xlu0 %v2101_v22, %s2674_s18 }
 0x194   :  { %v271_v23 = vpop.permute.xlu0 %270 }
 0x195   :  { %v273_v24 = vmul.f32 %v2465_v20, %v271_v23 }
 0x197   :  { %275 = vrot.lane.b32.xlu0 %v273_v24, %s2675_s3 }
 0x209   :  { %v276_v26 = vpop.permute.xlu0 %275 }
 0x20a   :  { %v278_v27 = vadd.f32 %v276_v26, %v268_v25 }
 0x20c   :  { %2466 = vtanh.f32 %v278_v27  ;;  %v373_v44 = vrot.slane %v278_v27, 6 }
 0x219   :  { %v2467_v28 = vpop.eup %2466 }
 0x21a   :  { %281 = vrot.lane.b32.xlu1 %v2467_v28, %s2674_s18 }
 0x28c   :  { %v282_v29 = vpop.permute.xlu1 %281 }
 0x28d   :  { %v2821_v30 = vmul.f32 %v2465_v20, %v282_v29 }
 0x28f   :  { %286 = vrot.lane.b32.xlu1 %v2821_v30, %s2675_s3 }
 0x301   :  { %v287_v31 = vpop.permute.xlu1 %286 }
 0x302   :  { %2273 = vmatmul.mubr.msk.f32.vlgmr.msra.gmra.mxu0 %vm185_vm2, %v287_v31 }
 0x303   :  { %2287 = vmatpush3.msra.mxu0 %v2757_v2  ;;  %2294 = vmatprep.mubr.msk.f32.mxu0 %vm2673_vm0, %v2672_v0 }
 0x304   :  { %2288 = vmatprep.subr.mxu0 %v2672_v0 }
 0x305   :  { %2289 = vmatpush3.msra.mxu0 %v2763_v4 }
 0x306   :  { %2290 = vmatprep.subr.mxu0 %v2672_v0 }
 0x307   :  { %2291 = vmatpush3.msra.mxu0 %v2776_v7 }
 0x308   :  { %2292 = vmatprep.subr.mxu0 %v2672_v0 }
 0x309   :  { %2293 = vmatpush3.msra.mxu0 %v2782_v8 }
 0x30a   :  { %2308 = vmatprep.subr.mxu0 %v2672_v0 }
 0x3c2   :  { %v356_v32 = vpop.f32.mrf.mxu0 }
 0x3c3   :  { %v361_v33 = vrot.slane %v356_v32, 6 }
 0x3c4   :  { %v2274_v34 = vpop.f32.mrf.mxu0 }
 0x3c5   :  { %v363_v35 = vadd.f32 %v361_v33, %v2815_v13 }
 0x3c7   :  { %v2103_v36 = vmul.f32 -1.442695, %v363_v35 }
 0x3c9   :  { %2468 = vpow2.f32 %v2103_v36 }
 0x3d6   :  { %v2469_v37 = vpop.eup %2468 }
 0x3d7   :  { %v367_v38 = vadd.f32 1.0, %v2469_v37 }
 0x3d9   :  { %2470 = vrcp.f32 %v367_v38 }
 0x3e6   :  { %v2471_v39 = vpop.eup %2470 }
 0x3e7   :  { %v370_v40 = vmul.f32 2.0, %v2471_v39  ;;  %v375_v45 = vmul.f32 %v2471_v39, %v373_v44 }
 0x3e9   :  { %v2104_v41 = vadd.f32 -1.0, %v370_v40 }
 0x3eb   :  { %377 = vrot.lane.b32.xlu0 %v2104_v41, %s2674_s18 }
 0x45d   :  { %v378_v42 = vpop.permute.xlu0 %377 }
 0x45e   :  { %v380_v43 = vmul.f32 %v2471_v39, %v378_v42 }
 0x460   :  { %382 = vrot.lane.b32.xlu1 %v380_v43, %s2675_s3 }
 0x4d2   :  { %v383_v46 = vpop.permute.xlu1 %382 }
 0x4d3   :  { %v385_v47 = vadd.f32 %v383_v46, %v375_v45 }
 0x4d5   :  { %2472 = vtanh.f32 %v385_v47  ;;  %v481_v3 = vrot.slane %v385_v47, 6 }
 0x4e2   :  { %v2473_v48 = vpop.eup %2472 }
 0x4e3   :  { %388 = vrot.lane.b32.xlu0 %v2473_v48, %s2674_s18 }
 0x555   :  { %v389_v49 = vpop.permute.xlu0 %388 }
 0x556   :  { %v391_v50 = vmul.f32 %v2471_v39, %v389_v49 }
 0x558   :  { %v393_v51 = vrot.slane %v391_v50, 2  ;;  %v1037_v15 = vsel %vm1036_vm3, %v2821_v30, %v391_v50 }
 0x55a   :  { %394 = vrot.lane.b32.xlu1 %v393_v51, %s2675_s3 }
 0x5cc   :  { %v395_v52 = vpop.permute.xlu1 %394 }
 0x5cd   :  { %2284 = vmatmul.mubr.msk.f32.vlgmr.msra.gmra.mxu1 %vm185_vm2, %v395_v52 }
 0x5ce   :  { %2298 = vmatpush3.msra.mxu1 %v2757_v2  ;;  %2305 = vmatprep.mubr.msk.f32.mxu1 %vm2673_vm0, %v2672_v0 }
 0x5cf   :  { %2299 = vmatprep.subr.mxu1 %v2672_v0 }
 0x5d0   :  { %2300 = vmatpush3.msra.mxu1 %v2763_v4 }
 0x5d1   :  { %2301 = vmatprep.subr.mxu1 %v2672_v0 }
 0x5d2   :  { %2302 = vmatpush3.msra.mxu1 %v2776_v7 }
 0x5d3   :  { %2303 = vmatprep.subr.mxu1 %v2672_v0 }
 0x5d4   :  { %2304 = vmatpush3.msra.mxu1 %v2782_v8 }
 0x5d5   :  { %2319 = vmatprep.subr.mxu1 %v2672_v0 }
 0x68d   :  { %v464_v53 = vpop.f32.mrf.mxu1 }
 0x68e   :  { %v469_v54 = vrot.slane %v464_v53, 4 }
 0x68f   :  { %v2285_v55 = vpop.f32.mrf.mxu1 }
 0x690   :  { %v471_v56 = vadd.f32 %v469_v54, %v2815_v13 }
 0x692   :  { %v2106_v57 = vmul.f32 -1.442695, %v471_v56 }
 0x694   :  { %2474 = vpow2.f32 %v2106_v57 }
 0x6a1   :  { %v2475_v58 = vpop.eup %2474 }
 0x6a2   :  { %v475_v59 = vadd.f32 1.0, %v2475_v58 }
 0x6a4   :  { %2476 = vrcp.f32 %v475_v59 }
 0x6b1   :  { %v2477_v60 = vpop.eup %2476 }
 0x6b2   :  { %v478_v61 = vmul.f32 2.0, %v2477_v60  ;;  %v483_v5 = vmul.f32 %v2477_v60, %v481_v3 }
 0x6b4   :  { %v2107_v62 = vadd.f32 -1.0, %v478_v61 }
 0x6b6   :  { %485 = vrot.lane.b32.xlu0 %v2107_v62, %s2674_s18 }
 0x728   :  { %v486_v63 = vpop.permute.xlu0 %485 }
 0x729   :  { %v488_v1 = vmul.f32 %v2477_v60, %v486_v63 }
 0x72b   :  { %490 = vrot.lane.b32.xlu1 %v488_v1, %s2675_s3 }
 0x79d   :  { %v491_v6 = vpop.permute.xlu1 %490 }
 0x79e   :  { %v493_v9 = vadd.f32 %v491_v6, %v483_v5 }
 0x7a0   :  { %2478 = vtanh.f32 %v493_v9  ;;  %v589_v31 = vrot.slane %v493_v9, 6 }
 0x7ad   :  { %v2479_v10 = vpop.eup %2478 }
 0x7ae   :  { %496 = vrot.lane.b32.xlu0 %v2479_v10, %s2674_s18 }
 0x820   :  { %v497_v12 = vpop.permute.xlu0 %496 }
 0x821   :  { %v499_v14 = vmul.f32 %v2477_v60, %v497_v12 }
 0x823   :  { %v501_v16 = vrot.slane %v499_v14, 4  ;;  %v1039_v17 = vsel %vm1038_vm4, %v1037_v15, %v499_v14 }
 0x825   :  { %502 = vrot.lane.b32.xlu1 %v501_v16, %s2675_s3 }
 0x897   :  { %v503_v18 = vpop.permute.xlu1 %502 }
 0x898   :  { %2295 = vmatmul.mubr.msk.f32.vlgmr.msra.gmra.mxu0 %vm185_vm2, %v503_v18 }
 0x899   :  { %2309 = vmatpush3.msra.mxu0 %v2757_v2  ;;  %2316 = vmatprep.mubr.msk.f32.mxu0 %vm2673_vm0, %v2672_v0 }
 0x89a   :  { %2310 = vmatprep.subr.mxu0 %v2672_v0 }
 0x89b   :  { %2311 = vmatpush3.msra.mxu0 %v2763_v4 }
 0x89c   :  { %2312 = vmatprep.subr.mxu0 %v2672_v0 }
 0x89d   :  { %2313 = vmatpush3.msra.mxu0 %v2776_v7 }
 0x89e   :  { %2314 = vmatprep.subr.mxu0 %v2672_v0 }
 0x89f   :  { %2315 = vmatpush3.msra.mxu0 %v2782_v8 }
 0x8a0   :  { %2330 = vmatprep.subr.mxu0 %v2672_v0 }
 0x958   :  { %v572_v19 = vpop.f32.mrf.mxu0 }
 0x959   :  { %v577_v20 = vrot.slane %v572_v19, 2 }
 0x95a   :  { %v2296_v21 = vpop.f32.mrf.mxu0 }
 0x95b   :  { %v579_v22 = vadd.f32 %v577_v20, %v2815_v13 }
 0x95d   :  { %v2109_v23 = vmul.f32 -1.442695, %v579_v22 }
 0x95f   :  { %2480 = vpow2.f32 %v2109_v23 }
 0x96c   :  { %v2481_v24 = vpop.eup %2480 }
 0x96d   :  { %v583_v25 = vadd.f32 1.0, %v2481_v24 }
 0x96f   :  { %2482 = vrcp.f32 %v583_v25 }
 0x97c   :  { %v2483_v26 = vpop.eup %2482 }
 0x97d   :  { %v586_v27 = vmul.f32 2.0, %v2483_v26  ;;  %v591_v32 = vmul.f32 %v2483_v26, %v589_v31 }
 0x97f   :  { %v2110_v28 = vadd.f32 -1.0, %v586_v27 }
 0x981   :  { %593 = vrot.lane.b32.xlu0 %v2110_v28, %s2674_s18 }
 0x9f3   :  { %v594_v29 = vpop.permute.xlu0 %593 }
 0x9f4   :  { %v596_v30 = vmul.f32 %v2483_v26, %v594_v29 }
 0x9f6   :  { %598 = vrot.lane.b32.xlu1 %v596_v30, %s2675_s3 }
 0xa68   :  { %v599_v33 = vpop.permute.xlu1 %598 }
 0xa69   :  { %v601_v34 = vadd.f32 %v599_v33, %v591_v32 }
 0xa6b   :  { %2484 = vtanh.f32 %v601_v34  ;;  %v694_v51 = vrot.slane %v601_v34, 6 }
 0xa78   :  { %v2485_v13 = vpop.eup %2484 }
 0xa79   :  { %604 = vrot.lane.b32.xlu0 %v2485_v13, %s2674_s18 }
 0xaeb   :  { %v605_v35 = vpop.permute.xlu0 %604 }
 0xaec   :  { %v607_v36 = vmul.f32 %v2483_v26, %v605_v35 }
 0xaee   :  { %v609_v37 = vrot.slane %v607_v36, 6  ;;  %v2876_v38 = vsel %vm1040_vm5, %v1039_v17, %v607_v36 }
 0xaf0   :  { %610 = vrot.lane.b32.xlu1 %v609_v37, %s2675_s3 }
 0xb62   :  { %v611_v39 = vpop.permute.xlu1 %610 }
 0xb63   :  { %2306 = vmatmul.mubr.msk.f32.vlgmr.msra.gmra.mxu1 %vm185_vm2, %v611_v39 }
 0xb64   :  { %2320 = vmatpush3.msra.mxu1 %v2757_v2  ;;  %2327 = vmatprep.mubr.msk.f32.mxu1 %vm2673_vm0, %v2672_v0 }
 0xb65   :  { %2321 = vmatprep.subr.mxu1 %v2672_v0 }
 0xb66   :  { %2322 = vmatpush3.msra.mxu1 %v2763_v4 }
 0xb67   :  { %2323 = vmatprep.subr.mxu1 %v2672_v0 }
 0xb68   :  { %2324 = vmatpush3.msra.mxu1 %v2776_v7 }
 0xb69   :  { %2325 = vmatprep.subr.mxu1 %v2672_v0 }
 0xb6a   :  { %2326 = vmatpush3.msra.mxu1 %v2782_v8 }
 0xc23   :  { %v680_v40 = vpop.f32.mrf.mxu1 }
 0xc24   :  { %v684_v41 = vadd.f32 %v680_v40, %v2813_v11 }
 0xc25   :  { %v2307_v42 = vpop.f32.mrf.mxu1 }
 0xc26   :  { %v2112_v43 = vmul.f32 -1.442695, %v684_v41 }
 0xc28   :  { %2486 = vpow2.f32 %v2112_v43 }
 0xc35   :  { %v2487_v44 = vpop.eup %2486 }
 0xc36   :  { %v688_v45 = vadd.f32 1.0, %v2487_v44 }
 0xc38   :  { %2488 = vrcp.f32 %v688_v45 }
 0xc45   :  { %v2489_v46 = vpop.eup %2488 }
 0xc46   :  { %v691_v47 = vmul.f32 2.0, %v2489_v46  ;;  %v696_v52 = vmul.f32 %v2489_v46, %v694_v51 }
 0xc48   :  { %v2113_v48 = vadd.f32 -1.0, %v691_v47 }
 0xc4a   :  { %698 = vrot.lane.b32.xlu0 %v2113_v48, %s2674_s18 }
 0xcbc   :  { %v699_v49 = vpop.permute.xlu0 %698 }
 0xcbd   :  { %v701_v50 = vmul.f32 %v2489_v46, %v699_v49 }
 0xcbf   :  { %703 = vrot.lane.b32.xlu1 %v701_v50, %s2675_s3 }
 0xd31   :  { %v704_v53 = vpop.permute.xlu1 %703 }
 0xd32   :  { %v706_v54 = vadd.f32 %v704_v53, %v696_v52 }
 0xd34   :  { %2490 = vtanh.f32 %v706_v54 }
 0xd41   :  { %v2491_v55 = vpop.eup %2490 }
 0xd42   :  { %709 = vrot.lane.b32.xlu0 %v2491_v55, %s2674_s18 }
 0xdb4   :  { %v710_v56 = vpop.permute.xlu0 %709 }
 0xdb5   :  { %v2893_v57 = vmul.f32 %v2489_v46, %v710_v56 }
 0xdb7   :  { %714 = vrot.lane.b32.xlu1 %v2893_v57, %s2675_s3 }
 0xe29   :  { %v715_v58 = vpop.permute.xlu1 %714 }
 0xe2a   :  { %2317 = vmatmul.mubr.msk.f32.vlgmr.msra.gmra.mxu0 %vm185_vm2, %v715_v58  ;;  %v1048_v58 = vld [vmem:[#allocation5 + $0x18] sm:$0xff] }
 0xe2b   :  { %2331 = vmatpush3.msra.mxu0 %v2757_v2  ;;  %2338 = vmatprep.mubr.msk.f32.mxu0 %vm2673_vm0, %v2672_v0 }
 0xe2c   :  { %2332 = vmatprep.subr.mxu0 %v2672_v0  ;;  %2341 = vmatprep.subr.mxu1 %v1048_v58 }
 0xe2d   :  { %2333 = vmatpush3.msra.mxu0 %v2763_v4 }
 0xe2e   :  { %2334 = vmatprep.subr.mxu0 %v2672_v0 }
 0xe2f   :  { %2335 = vmatpush3.msra.mxu0 %v2776_v7 }
 0xe30   :  { %2336 = vmatprep.subr.mxu0 %v2672_v0 }
 0xe31   :  { %2337 = vmatpush3.msra.mxu0 %v2782_v8  ;;  %v801_v8 = vrot.slane %v706_v54, 6 }
 0xe32   :  { %2352 = vmatprep.subr.mxu0 %v2672_v0 }
 0xeea   :  { %v784_v59 = vpop.f32.mrf.mxu0 }
 0xeeb   :  { %v789_v60 = vrot.slane %v784_v59, 6  ;;  %v1047_v59 = vld [vmem:[#allocation5 + $0x10] sm:$0xff] }
 0xeec   :  { %v2318_v2 = vpop.f32.mrf.mxu0 }
 0xeed   :  { %v791_v61 = vadd.f32 %v789_v60, %v2813_v11  ;;  %v2933_v60 = vld [vmem:[#allocation7 + $0x18] sm:$0xff]  ;;  %v2936_v2 = vld [vmem:[#allocation7 + $0x10] sm:$0xff] }
 0xeef   :  { %v2115_v62 = vmul.f32 -1.442695, %v791_v61  ;;  %v1046_v61 = vld [vmem:[#allocation5 + $0x8] sm:$0xff] }
 0xef1   :  { %2492 = vpow2.f32 %v2115_v62  ;;  %v1045_v62 = vld [vmem:[#allocation5] sm:$0xff] }
 0xefe   :  { %v2493_v63 = vpop.eup %2492 }
 0xeff   :  { %v795_v1 = vadd.f32 1.0, %v2493_v63 }
 0xf01   :  { %2494 = vrcp.f32 %v795_v1  ;;  %v2947_v1 = vld [vmem:[#allocation7] sm:$0xff] }
 0xf0e   :  { %v2495_v4 = vpop.eup %2494 }
 0xf0f   :  { %v798_v3 = vmul.f32 2.0, %v2495_v4  ;;  %v803_v9 = vmul.f32 %v2495_v4, %v801_v8 }
 0xf11   :  { %v2116_v5 = vadd.f32 -1.0, %v798_v3 }
 0xf13   :  { %805 = vrot.lane.b32.xlu0 %v2116_v5, %s2674_s18 }
 0xf85   :  { %v806_v7 = vpop.permute.xlu0 %805 }
 0xf86   :  { %v808_v6 = vmul.f32 %v2495_v4, %v806_v7 }
 0xf88   :  { %810 = vrot.lane.b32.xlu1 %v808_v6, %s2675_s3 }
 0xffa   :  { %v811_v10 = vpop.permute.xlu1 %810 }
 0xffb   :  { %v813_v12 = vadd.f32 %v811_v10, %v803_v9  ;;  %v2123_v9 = vld [vmem:[%s3097_s6] ss:$0 sm:$0xff] }
 0xffd   :  { %2496 = vtanh.f32 %v813_v12  ;;  %v909_v31 = vrot.slane %v813_v12, 6 }
0x100a   :  { %v2497_v14 = vpop.eup %2496 }
0x100b   :  { %816 = vrot.lane.b32.xlu0 %v2497_v14, %s2674_s18 }
0x107d   :  { %v817_v15 = vpop.permute.xlu0 %816 }
0x107e   :  { %v819_v16 = vmul.f32 %v2495_v4, %v817_v15 }
0x1080   :  { %v821_v17 = vrot.slane %v819_v16, 2  ;;  %v1042_v37 = vsel %vm1036_vm3, %v2893_v57, %v819_v16 }
0x1082   :  { %822 = vrot.lane.b32.xlu1 %v821_v17, %s2675_s3 }
0x10f4   :  { %v823_v18 = vpop.permute.xlu1 %822 }
0x10f5   :  { %2328 = vmatmul.mubr.msk.f32.vlgmr.msra.gmra.mxu1 %vm185_vm2, %v823_v18 }
0x10f6   :  { %2342 = vmatpush3.msra.mxu1 %v1048_v58 }
0x10f7   :  { %2343 = vmatprep.subr.mxu1 %v1047_v59 }
0x10f8   :  { %2344 = vmatpush3.msra.mxu1 %v1047_v59 }
0x10f9   :  { %2345 = vmatprep.subr.mxu1 %v1046_v61 }
0x10fa   :  { %2346 = vmatpush3.msra.mxu1 %v1046_v61 }
0x10fb   :  { %2347 = vmatprep.subr.mxu1 %v1045_v62 }
0x10fc   :  { %2348 = vmatpush3.msra.mxu1 %v1045_v62 }
0x10fd   :  { %2363 = vmatprep.subr.mxu1 %v2672_v0 }
0x11b5   :  { %v892_v19 = vpop.f32.mrf.mxu1 }
0x11b6   :  { %v897_v20 = vrot.slane %v892_v19, 4 }
0x11b7   :  { %v2329_v21 = vpop.f32.mrf.mxu1 }
0x11b8   :  { %v899_v22 = vadd.f32 %v897_v20, %v2813_v11 }
0x11ba   :  { %v2118_v23 = vmul.f32 -1.442695, %v899_v22 }
0x11bc   :  { %2498 = vpow2.f32 %v2118_v23 }
0x11c9   :  { %v2499_v24 = vpop.eup %2498 }
0x11ca   :  { %v903_v25 = vadd.f32 1.0, %v2499_v24 }
0x11cc   :  { %2500 = vrcp.f32 %v903_v25 }
0x11d9   :  { %v2501_v26 = vpop.eup %2500 }
0x11da   :  { %v906_v27 = vmul.f32 2.0, %v2501_v26  ;;  %v911_v32 = vmul.f32 %v2501_v26, %v909_v31 }
0x11dc   :  { %v2119_v28 = vadd.f32 -1.0, %v906_v27 }
0x11de   :  { %913 = vrot.lane.b32.xlu0 %v2119_v28, %s2674_s18 }
0x1250   :  { %v914_v29 = vpop.permute.xlu0 %913 }
0x1251   :  { %v916_v30 = vmul.f32 %v2501_v26, %v914_v29 }
0x1253   :  { %918 = vrot.lane.b32.xlu1 %v916_v30, %s2675_s3 }
0x12c5   :  { %v919_v33 = vpop.permute.xlu1 %918 }
0x12c6   :  { %v921_v34 = vadd.f32 %v919_v33, %v911_v32 }
0x12c8   :  { %2502 = vtanh.f32 %v921_v34  ;;  %v1017_v54 = vrot.slane %v921_v34, 6 }
0x12d5   :  { %v2503_v13 = vpop.eup %2502 }
0x12d6   :  { %924 = vrot.lane.b32.xlu0 %v2503_v13, %s2674_s18 }
0x1348   :  { %v925_v35 = vpop.permute.xlu0 %924 }
0x1349   :  { %v927_v36 = vmul.f32 %v2501_v26, %v925_v35 }
0x134b   :  { %v929_v39 = vrot.slane %v927_v36, 4  ;;  %v2921_v40 = vsel %vm1038_vm4, %v1042_v37, %v927_v36 }
0x134d   :  { %930 = vrot.lane.b32.xlu1 %v929_v39, %s2675_s3 }
0x13bf   :  { %v931_v41 = vpop.permute.xlu1 %930 }
0x13c0   :  { %2339 = vmatmul.mubr.msk.f32.vlgmr.msra.gmra.mxu0 %vm185_vm2, %v931_v41 }
0x13c1   :  { %2360 = vmatprep.mubr.msk.f32.mxu0 %vm2673_vm0, %v2672_v0  ;;  %2353 = vmatpush3.msra.mxu0 %v2933_v60 }
0x13c2   :  { %2354 = vmatprep.subr.mxu0 %v2672_v0 }
0x13c3   :  { %2355 = vmatpush3.msra.mxu0 %v2936_v2 }
0x13c4   :  { %2356 = vmatprep.subr.mxu0 %v2672_v0 }
0x1480   :  { %v1000_v42 = vpop.f32.mrf.mxu0 }
0x1481   :  { %v1005_v43 = vrot.slane %v1000_v42, 2 }
0x1482   :  { %v2340_v44 = vpop.f32.mrf.mxu0 }
0x1483   :  { %v1007_v45 = vadd.f32 %v1005_v43, %v2813_v11 }
0x1485   :  { %v2121_v46 = vmul.f32 -1.442695, %v1007_v45 }
0x1487   :  { %2504 = vpow2.f32 %v2121_v46 }
0x1494   :  { %v2505_v47 = vpop.eup %2504 }
0x1495   :  { %v1011_v48 = vadd.f32 1.0, %v2505_v47 }
0x1497   :  { %2506 = vrcp.f32 %v1011_v48 }
0x14a4   :  { %v2507_v49 = vpop.eup %2506 }
0x14a5   :  { %v1014_v50 = vmul.f32 2.0, %v2507_v49  ;;  %v1019_v55 = vmul.f32 %v2507_v49, %v1017_v54 }
0x14a7   :  { %v2122_v51 = vadd.f32 -1.0, %v1014_v50 }
0x14a9   :  { %1021 = vrot.lane.b32.xlu0 %v2122_v51, %s2674_s18 }
0x151b   :  { %v1022_v52 = vpop.permute.xlu0 %1021 }
0x151c   :  { %v1024_v53 = vmul.f32 %v2507_v49, %v1022_v52 }
0x151e   :  { %1026 = vrot.lane.b32.xlu1 %v1024_v53, %s2675_s3 }
0x1522   :  { %1062 = vrot.lane.b32.xlu1 %v2876_v38, %s2675_s3  ;;  %v2939_v38 = vld [vmem:[#allocation7 + $0x8] sm:$0xff] }
0x1523   :  { %2357 = vmatpush3.msra.mxu0 %v2939_v38 }
0x1524   :  { %2358 = vmatprep.subr.mxu0 %v2672_v0 }
0x1525   :  { %2359 = vmatpush3.msra.mxu0 %v2947_v1 }
0x1526   :  { %2361 = vmatmul.mubr.f32.vlgmr.msra.gmra.mxu0 %v2672_v0  ;;  %2374 = vmatprep.subr.mxu0 %v2672_v0 }
0x1527   :  { %2375 = vmatpush3.msra.mxu0 %v2933_v60  ;;  %2382 = vmatprep.mubr.msk.f32.mxu0 %vm2673_vm0, %v2672_v0 }
0x1528   :  { %2376 = vmatprep.subr.mxu0 %v2672_v0 }
0x1529   :  { %2377 = vmatpush3.msra.mxu0 %v2936_v2 }
0x152a   :  { %2378 = vmatprep.subr.mxu0 %v2672_v0 }
0x152b   :  { %2379 = vmatpush3.msra.mxu0 %v2939_v38 }
0x152c   :  { %2380 = vmatprep.subr.mxu0 %v2672_v0 }
0x152d   :  { %2381 = vmatpush3.msra.mxu0 %v2947_v1 }
0x152e   :  { %2396 = vmatprep.subr.mxu0 %v2672_v0 }
0x1590   :  { %v1027_v11 = vpop.permute.xlu1 %1026 }
0x1591   :  { %v1029_v56 = vadd.f32 %v1027_v11, %v1019_v55 }
0x1593   :  { %2508 = vtanh.f32 %v1029_v56 }
0x1594   :  { %v1063_v57 = vpop.permute.xlu1 %1062 }
0x1595   :  { %2349 = vmatprep.mubr.msk.f32.mxu1 %vm185_vm2, %v1063_v57 }
0x15a0   :  { %v2509_v63 = vpop.eup %2508 }
0x15a1   :  { %1032 = vrot.lane.b32.xlu0 %v2509_v63, %s2674_s18 }
0x15e6   :  { %v1211_v6 = vpop.f32.mrf.mxu0 }
0x15e8   :  { %v2362_v8 = vpop.f32.mrf.mxu0 }
0x1613   :  { %v1033_v4 = vpop.permute.xlu0 %1032 }
0x1614   :  { %v1035_v3 = vmul.f32 %v2507_v49, %v1033_v4 }
0x1616   :  { %v1044_v5 = vsel %vm1040_vm5, %v2921_v40, %v1035_v3 }
0x1617   :  { %1064 = vrot.lane.b32.xlu0 %v1044_v5, %s2675_s3 }
0x1689   :  { %v1065_v7 = vpop.permute.xlu0 %1064 }
0x168a   :  { %2350 = vmatmul.mubr.msk.f32.vlgmr.msra.gmra.mxu1 %vm185_vm2, %v1065_v7 }
0x168b   :  { %2364 = vmatpush3.msra.mxu1 %v2933_v60  ;;  %2371 = vmatprep.mubr.msk.f32.mxu1 %vm2673_vm0, %v2672_v0 }
0x168c   :  { %2365 = vmatprep.subr.mxu1 %v2672_v0 }
0x168d   :  { %2366 = vmatpush3.msra.mxu1 %v2936_v2 }
0x168e   :  { %2367 = vmatprep.subr.mxu1 %v2672_v0 }
0x168f   :  { %2368 = vmatpush3.msra.mxu1 %v2939_v38 }
0x1690   :  { %2369 = vmatprep.subr.mxu1 %v2672_v0 }
0x1691   :  { %2370 = vmatpush3.msra.mxu1 %v2947_v1 }
0x1692   :  { %2385 = vmatprep.subr.mxu1 %v2672_v0 }
0x174a   :  { %v2351_v10 = vpop.f32.mrf.mxu1 }
0x174b   :  { %v2979_v12 = vadd.f32 %v2351_v10, %v2123_v9 }
0x174c   :  { %v1136_v14 = vpop.f32.mrf.mxu1 }
0x174d   :  { %v2981_v15 = vadd.f32 %v2123_v9, %v1136_v14 }
0x174f   :  { %v1215_v16 = vadd.f32 %v1211_v6, %v2981_v15 }
0x1751   :  { %v2126_v17 = vmul.f32 -1.442695, %v1215_v16 }
0x1753   :  { %2510 = vpow2.f32 %v2126_v17 }
0x1760   :  { %v2511_v18 = vpop.eup %2510 }
0x1761   :  { %v1219_v19 = vadd.f32 1.0, %v2511_v18 }
0x1763   :  { %2512 = vrcp.f32 %v1219_v19 }
0x1770   :  { %v2513_v20 = vpop.eup %2512 }
0x1771   :  { %v1222_v21 = vmul.f32 2.0, %v2513_v20  ;;  %v1224_v25 = vmul.f32 0.0, %v2513_v20 }
0x1773   :  { %v2127_v22 = vadd.f32 -1.0, %v1222_v21 }
0x1775   :  { %1226 = vrot.lane.b32.xlu1 %v2127_v22, %s2674_s18 }
0x17e7   :  { %v1227_v23 = vpop.permute.xlu1 %1226 }
0x17e8   :  { %v1229_v24 = vmul.f32 %v2513_v20, %v1227_v23 }
0x17ea   :  { %1231 = vrot.lane.b32.xlu0 %v1229_v24, %s2675_s3 }
0x185c   :  { %v1232_v26 = vpop.permute.xlu0 %1231 }
0x185d   :  { %v1234_v27 = vadd.f32 %v1232_v26, %v1224_v25 }
0x185f   :  { %2514 = vtanh.f32 %v1234_v27  ;;  %v1329_v44 = vrot.slane %v1234_v27, 6 }
0x186c   :  { %v2515_v28 = vpop.eup %2514 }
0x186d   :  { %1237 = vrot.lane.b32.xlu1 %v2515_v28, %s2674_s18 }
0x18df   :  { %v1238_v29 = vpop.permute.xlu1 %1237 }
0x18e0   :  { %v1240_v30 = vmul.f32 %v2513_v20, %v1238_v29 }
0x18e2   :  { %1242 = vrot.lane.b32.xlu0 %v1240_v30, %s2675_s3 }
0x1954   :  { %v1243_v31 = vpop.permute.xlu0 %1242 }
0x1955   :  { %2372 = vmatmul.mubr.msk.f32.vlgmr.msra.gmra.mxu1 %vm185_vm2, %v1243_v31 }
0x1956   :  { %2386 = vmatpush3.msra.mxu1 %v2933_v60  ;;  %2393 = vmatprep.mubr.msk.f32.mxu1 %vm2673_vm0, %v2672_v0 }
0x1957   :  { %2387 = vmatprep.subr.mxu1 %v2672_v0 }
0x1958   :  { %2388 = vmatpush3.msra.mxu1 %v2936_v2 }
0x1959   :  { %2389 = vmatprep.subr.mxu1 %v2672_v0 }
0x195a   :  { %2390 = vmatpush3.msra.mxu1 %v2939_v38 }
0x195b   :  { %2391 = vmatprep.subr.mxu1 %v2672_v0 }
0x195c   :  { %2392 = vmatpush3.msra.mxu1 %v2947_v1 }
0x195d   :  { %2407 = vmatprep.subr.mxu1 %v2672_v0 }
0x1a15   :  { %v1312_v32 = vpop.f32.mrf.mxu1 }
0x1a16   :  { %v1317_v33 = vrot.slane %v1312_v32, 6 }
0x1a17   :  { %v2373_v34 = vpop.f32.mrf.mxu1 }
0x1a18   :  { %v1319_v13 = vadd.f32 %v1317_v33, %v2981_v15 }
0x1a1a   :  { %v2129_v35 = vmul.f32 -1.442695, %v1319_v13 }
0x1a1c   :  { %2516 = vpow2.f32 %v2129_v35 }
0x1a29   :  { %v2517_v36 = vpop.eup %2516 }
0x1a2a   :  { %v1323_v37 = vadd.f32 1.0, %v2517_v36 }
0x1a2c   :  { %2518 = vrcp.f32 %v1323_v37 }
0x1a39   :  { %v2519_v39 = vpop.eup %2518 }
0x1a3a   :  { %v1326_v40 = vmul.f32 2.0, %v2519_v39  ;;  %v1331_v45 = vmul.f32 %v2519_v39, %v1329_v44 }
0x1a3c   :  { %v2130_v41 = vadd.f32 -1.0, %v1326_v40 }
0x1a3e   :  { %1333 = vrot.lane.b32.xlu1 %v2130_v41, %s2674_s18 }
0x1ab0   :  { %v1334_v42 = vpop.permute.xlu1 %1333 }
0x1ab1   :  { %v1336_v43 = vmul.f32 %v2519_v39, %v1334_v42 }
0x1ab3   :  { %1338 = vrot.lane.b32.xlu0 %v1336_v43, %s2675_s3 }
0x1b25   :  { %v1339_v46 = vpop.permute.xlu0 %1338 }
0x1b26   :  { %v1341_v47 = vadd.f32 %v1339_v46, %v1331_v45 }
0x1b28   :  { %2520 = vtanh.f32 %v1341_v47  ;;  %v1437_v3 = vrot.slane %v1341_v47, 6 }
0x1b35   :  { %v2521_v48 = vpop.eup %2520 }
0x1b36   :  { %1344 = vrot.lane.b32.xlu1 %v2521_v48, %s2674_s18 }
0x1ba8   :  { %v1345_v49 = vpop.permute.xlu1 %1344 }
0x1ba9   :  { %v1347_v50 = vmul.f32 %v2519_v39, %v1345_v49 }
0x1bab   :  { %v1349_v51 = vrot.slane %v1347_v50, 2 }
0x1bad   :  { %1350 = vrot.lane.b32.xlu0 %v1349_v51, %s2675_s3 }
0x1c1f   :  { %v1351_v52 = vpop.permute.xlu0 %1350 }
0x1c20   :  { %2383 = vmatmul.mubr.msk.f32.vlgmr.msra.gmra.mxu0 %vm185_vm2, %v1351_v52 }
0x1c21   :  { %2397 = vmatpush3.msra.mxu0 %v2933_v60  ;;  %2404 = vmatprep.mubr.msk.f32.mxu0 %vm2673_vm0, %v2672_v0 }
0x1c22   :  { %2398 = vmatprep.subr.mxu0 %v2672_v0 }
0x1c23   :  { %2399 = vmatpush3.msra.mxu0 %v2936_v2 }
0x1c24   :  { %2400 = vmatprep.subr.mxu0 %v2672_v0 }
0x1c25   :  { %2401 = vmatpush3.msra.mxu0 %v2939_v38 }
0x1c26   :  { %2402 = vmatprep.subr.mxu0 %v2672_v0 }
0x1c27   :  { %2403 = vmatpush3.msra.mxu0 %v2947_v1 }
0x1c28   :  { %2418 = vmatprep.subr.mxu0 %v2672_v0 }
0x1ce0   :  { %v1420_v53 = vpop.f32.mrf.mxu0 }
0x1ce1   :  { %v1425_v54 = vrot.slane %v1420_v53, 4 }
0x1ce2   :  { %v2384_v55 = vpop.f32.mrf.mxu0 }
0x1ce3   :  { %v1427_v11 = vadd.f32 %v1425_v54, %v2981_v15 }
0x1ce5   :  { %v2132_v56 = vmul.f32 -1.442695, %v1427_v11 }
0x1ce7   :  { %2522 = vpow2.f32 %v2132_v56 }
0x1cf4   :  { %v2523_v57 = vpop.eup %2522 }
0x1cf5   :  { %v1431_v58 = vadd.f32 1.0, %v2523_v57 }
0x1cf7   :  { %2524 = vrcp.f32 %v1431_v58 }
0x1d04   :  { %v2525_v59 = vpop.eup %2524 }
0x1d05   :  { %v1434_v61 = vmul.f32 2.0, %v2525_v59  ;;  %v1439_v5 = vmul.f32 %v2525_v59, %v1437_v3 }
0x1d07   :  { %v2133_v62 = vadd.f32 -1.0, %v1434_v61 }
0x1d09   :  { %1441 = vrot.lane.b32.xlu1 %v2133_v62, %s2674_s18 }
0x1d7b   :  { %v1442_v63 = vpop.permute.xlu1 %1441 }
0x1d7c   :  { %v1444_v4 = vmul.f32 %v2525_v59, %v1442_v63 }
0x1d7e   :  { %1446 = vrot.lane.b32.xlu0 %v1444_v4, %s2675_s3 }
0x1df0   :  { %v1447_v7 = vpop.permute.xlu0 %1446 }
0x1df1   :  { %v1449_v6 = vadd.f32 %v1447_v7, %v1439_v5 }
0x1df3   :  { %2526 = vtanh.f32 %v1449_v6  ;;  %v1545_v29 = vrot.slane %v1449_v6, 6 }
0x1e00   :  { %v2527_v8 = vpop.eup %2526 }
0x1e01   :  { %1452 = vrot.lane.b32.xlu1 %v2527_v8, %s2674_s18 }
0x1e73   :  { %v1453_v9 = vpop.permute.xlu1 %1452 }
0x1e74   :  { %v1455_v10 = vmul.f32 %v2525_v59, %v1453_v9 }
0x1e76   :  { %v1457_v14 = vrot.slane %v1455_v10, 4 }
0x1e78   :  { %1458 = vrot.lane.b32.xlu0 %v1457_v14, %s2675_s3 }
0x1eea   :  { %v1459_v16 = vpop.permute.xlu0 %1458 }
0x1eeb   :  { %2394 = vmatmul.mubr.msk.f32.vlgmr.msra.gmra.mxu1 %vm185_vm2, %v1459_v16 }
0x1eec   :  { %2408 = vmatpush3.msra.mxu1 %v2933_v60  ;;  %2415 = vmatprep.mubr.msk.f32.mxu1 %vm2673_vm0, %v2672_v0 }
0x1eed   :  { %2409 = vmatprep.subr.mxu1 %v2672_v0 }
0x1eee   :  { %2410 = vmatpush3.msra.mxu1 %v2936_v2 }
0x1eef   :  { %2411 = vmatprep.subr.mxu1 %v2672_v0 }
0x1ef0   :  { %2412 = vmatpush3.msra.mxu1 %v2939_v38 }
0x1ef1   :  { %2413 = vmatprep.subr.mxu1 %v2672_v0 }
0x1ef2   :  { %2414 = vmatpush3.msra.mxu1 %v2947_v1 }
0x1ef3   :  { %2429 = vmatprep.subr.mxu1 %v2672_v0 }
0x1fab   :  { %v1528_v17 = vpop.f32.mrf.mxu1 }
0x1fac   :  { %v1533_v18 = vrot.slane %v1528_v17, 2 }
0x1fad   :  { %v2395_v19 = vpop.f32.mrf.mxu1 }
0x1fae   :  { %v1535_v20 = vadd.f32 %v1533_v18, %v2981_v15 }
0x1fb0   :  { %v2135_v21 = vmul.f32 -1.442695, %v1535_v20 }
0x1fb2   :  { %2528 = vpow2.f32 %v2135_v21 }
0x1fbf   :  { %v2529_v22 = vpop.eup %2528 }
0x1fc0   :  { %v1539_v23 = vadd.f32 1.0, %v2529_v22 }
0x1fc2   :  { %2530 = vrcp.f32 %v1539_v23 }
0x1fcf   :  { %v2531_v24 = vpop.eup %2530 }
0x1fd0   :  { %v1542_v25 = vmul.f32 2.0, %v2531_v24  ;;  %v1547_v30 = vmul.f32 %v2531_v24, %v1545_v29 }
0x1fd2   :  { %v2136_v26 = vadd.f32 -1.0, %v1542_v25 }
0x1fd4   :  { %1549 = vrot.lane.b32.xlu1 %v2136_v26, %s2674_s18 }
0x2046   :  { %v1550_v27 = vpop.permute.xlu1 %1549 }
0x2047   :  { %v1552_v28 = vmul.f32 %v2531_v24, %v1550_v27 }
0x2049   :  { %1554 = vrot.lane.b32.xlu0 %v1552_v28, %s2675_s3 }
0x20bb   :  { %v1555_v31 = vpop.permute.xlu0 %1554 }
0x20bc   :  { %v1557_v32 = vadd.f32 %v1555_v31, %v1547_v30 }
0x20be   :  { %2532 = vtanh.f32 %v1557_v32  ;;  %v1650_v48 = vrot.slane %v1557_v32, 6 }
0x20cb   :  { %v2533_v15 = vpop.eup %2532 }
0x20cc   :  { %1560 = vrot.lane.b32.xlu1 %v2533_v15, %s2674_s18 }
0x213e   :  { %v1561_v33 = vpop.permute.xlu1 %1560 }
0x213f   :  { %v1563_v34 = vmul.f32 %v2531_v24, %v1561_v33 }
0x2141   :  { %v1565_v13 = vrot.slane %v1563_v34, 6 }
0x2143   :  { %1566 = vrot.lane.b32.xlu0 %v1565_v13, %s2675_s3 }
0x21b5   :  { %v1567_v35 = vpop.permute.xlu0 %1566 }
0x21b6   :  { %2405 = vmatmul.mubr.msk.f32.vlgmr.msra.gmra.mxu0 %vm185_vm2, %v1567_v35 }
0x21b7   :  { %2419 = vmatpush3.msra.mxu0 %v2933_v60  ;;  %2426 = vmatprep.mubr.msk.f32.mxu0 %vm2673_vm0, %v2672_v0 }
0x21b8   :  { %2420 = vmatprep.subr.mxu0 %v2672_v0 }
0x21b9   :  { %2421 = vmatpush3.msra.mxu0 %v2936_v2 }
0x21ba   :  { %2422 = vmatprep.subr.mxu0 %v2672_v0 }
0x21bb   :  { %2423 = vmatpush3.msra.mxu0 %v2939_v38 }
0x21bc   :  { %2424 = vmatprep.subr.mxu0 %v2672_v0 }
0x21bd   :  { %2425 = vmatpush3.msra.mxu0 %v2947_v1 }
0x21be   :  { %2440 = vmatprep.subr.mxu0 %v2672_v0 }
0x2276   :  { %v1636_v36 = vpop.f32.mrf.mxu0 }
0x2277   :  { %v1640_v37 = vadd.f32 %v1636_v36, %v2979_v12 }
0x2278   :  { %v2406_v39 = vpop.f32.mrf.mxu0 }
0x2279   :  { %v2138_v40 = vmul.f32 -1.442695, %v1640_v37 }
0x227b   :  { %2534 = vpow2.f32 %v2138_v40 }
0x2288   :  { %v2535_v41 = vpop.eup %2534 }
0x2289   :  { %v1644_v42 = vadd.f32 1.0, %v2535_v41 }
0x228b   :  { %2536 = vrcp.f32 %v1644_v42 }
0x2298   :  { %v2537_v43 = vpop.eup %2536 }
0x2299   :  { %v1647_v44 = vmul.f32 2.0, %v2537_v43  ;;  %v1652_v49 = vmul.f32 %v2537_v43, %v1650_v48 }
0x229b   :  { %v2139_v45 = vadd.f32 -1.0, %v1647_v44 }
0x229d   :  { %1654 = vrot.lane.b32.xlu1 %v2139_v45, %s2674_s18 }
0x230f   :  { %v1655_v46 = vpop.permute.xlu1 %1654 }
0x2310   :  { %v1657_v47 = vmul.f32 %v2537_v43, %v1655_v46 }
0x2312   :  { %1659 = vrot.lane.b32.xlu0 %v1657_v47, %s2675_s3 }
0x2384   :  { %v1660_v50 = vpop.permute.xlu0 %1659 }
0x2385   :  { %v1662_v51 = vadd.f32 %v1660_v50, %v1652_v49 }
0x2387   :  { %2538 = vtanh.f32 %v1662_v51 }
0x2394   :  { %v2539_v52 = vpop.eup %2538 }
0x2395   :  { %1665 = vrot.lane.b32.xlu1 %v2539_v52, %s2674_s18  ;;  %v1994_v52 = vld [vmem:[#allocation8 + $0x10] sm:$0xff] }
0x2407   :  { %v1666_v53 = vpop.permute.xlu1 %1665 }
0x2408   :  { %v1668_v54 = vmul.f32 %v2537_v43, %v1666_v53  ;;  %v1993_v53 = vld [vmem:[#allocation8 + $0x8] sm:$0xff] }
0x240a   :  { %1670 = vrot.lane.b32.xlu0 %v1668_v54, %s2675_s3  ;;  %v1992_v54 = vld [vmem:[#allocation8] sm:$0xff] }
0x247c   :  { %v1671_v55 = vpop.permute.xlu0 %1670 }
0x247d   :  { %2416 = vmatmul.mubr.msk.f32.vlgmr.msra.gmra.mxu1 %vm185_vm2, %v1671_v55 }
0x247e   :  { %2430 = vmatpush3.msra.mxu1 %v2933_v60  ;;  %2437 = vmatprep.mubr.msk.f32.mxu1 %vm2673_vm0, %v2672_v0 }
0x247f   :  { %2431 = vmatprep.subr.mxu1 %v2672_v0 }
0x2480   :  { %2432 = vmatpush3.msra.mxu1 %v2936_v2 }
0x2481   :  { %2433 = vmatprep.subr.mxu1 %v2672_v0 }
0x2482   :  { %2434 = vmatpush3.msra.mxu1 %v2939_v38 }
0x2483   :  { %2435 = vmatprep.subr.mxu1 %v2672_v0 }
0x2484   :  { %2436 = vmatpush3.msra.mxu1 %v2947_v1  ;;  %v1757_v1 = vrot.slane %v1662_v51, 6 }
0x253d   :  { %v1740_v11 = vpop.f32.mrf.mxu1 }
0x253e   :  { %v1745_v56 = vrot.slane %v1740_v11, 6 }
0x253f   :  { %v2417_v57 = vpop.f32.mrf.mxu1 }
0x2540   :  { %v1747_v60 = vadd.f32 %v1745_v56, %v2979_v12 }
0x2542   :  { %v2141_v58 = vmul.f32 -1.442695, %v1747_v60 }
0x2544   :  { %2540 = vpow2.f32 %v2141_v58  ;;  %v2149_v58 = vld [vmem:[%s3099_s8] ss:$0 sm:$0xff] }
0x2551   :  { %v2541_v59 = vpop.eup %2540 }
0x2552   :  { %v1751_v61 = vadd.f32 1.0, %v2541_v59 }
0x2554   :  { %2542 = vrcp.f32 %v1751_v61 }
0x2561   :  { %v2543_v62 = vpop.eup %2542 }
0x2562   :  { %v1754_v2 = vmul.f32 2.0, %v2543_v62  ;;  %v1759_v3 = vmul.f32 %v2543_v62, %v1757_v1 }
0x2564   :  { %v2142_v63 = vadd.f32 -1.0, %v1754_v2 }
0x2566   :  { %1761 = vrot.lane.b32.xlu1 %v2142_v63, %s2674_s18 }
0x25d8   :  { %v1762_v38 = vpop.permute.xlu1 %1761 }
0x25d9   :  { %v1764_v4 = vmul.f32 %v2543_v62, %v1762_v38 }
0x25db   :  { %1766 = vrot.lane.b32.xlu0 %v1764_v4, %s2675_s3 }
0x264d   :  { %v1767_v5 = vpop.permute.xlu0 %1766 }
0x264e   :  { %v1769_v7 = vadd.f32 %v1767_v5, %v1759_v3 }
0x2650   :  { %2544 = vtanh.f32 %v1769_v7  ;;  %v1865_v28 = vrot.slane %v1769_v7, 6 }
0x265d   :  { %v2545_v6 = vpop.eup %2544 }
0x265e   :  { %1772 = vrot.lane.b32.xlu1 %v2545_v6, %s2674_s18 }
0x26d0   :  { %v1773_v8 = vpop.permute.xlu1 %1772 }
0x26d1   :  { %v1775_v9 = vmul.f32 %v2543_v62, %v1773_v8 }
0x26d3   :  { %v1777_v10 = vrot.slane %v1775_v9, 2 }
0x26d5   :  { %1778 = vrot.lane.b32.xlu0 %v1777_v10, %s2675_s3 }
0x2747   :  { %v1779_v14 = vpop.permute.xlu0 %1778 }
0x2748   :  { %2427 = vmatmul.mubr.msk.f32.vlgmr.msra.gmra.mxu0 %vm185_vm2, %v1779_v14 }
0x2749   :  { %2448 = vmatprep.mubr.msk.f32.mxu0 %vm2673_vm0, %v2672_v0 }
0x2808   :  { %v1848_v16 = vpop.f32.mrf.mxu0 }
0x2809   :  { %v1853_v17 = vrot.slane %v1848_v16, 4 }
0x280a   :  { %v2428_v18 = vpop.f32.mrf.mxu0 }
0x280b   :  { %v1855_v19 = vadd.f32 %v1853_v17, %v2979_v12 }
0x280d   :  { %v2144_v20 = vmul.f32 -1.442695, %v1855_v19 }
0x280f   :  { %2546 = vpow2.f32 %v2144_v20 }
0x281c   :  { %v2547_v21 = vpop.eup %2546 }
0x281d   :  { %v1859_v22 = vadd.f32 1.0, %v2547_v21 }
0x281f   :  { %2548 = vrcp.f32 %v1859_v22 }
0x282c   :  { %v2549_v23 = vpop.eup %2548 }
0x282d   :  { %v1862_v24 = vmul.f32 2.0, %v2549_v23  ;;  %v1867_v29 = vmul.f32 %v2549_v23, %v1865_v28 }
0x282f   :  { %v2145_v25 = vadd.f32 -1.0, %v1862_v24 }
0x2831   :  { %1869 = vrot.lane.b32.xlu1 %v2145_v25, %s2674_s18 }
0x28a3   :  { %v1870_v26 = vpop.permute.xlu1 %1869 }
0x28a4   :  { %v1872_v27 = vmul.f32 %v2549_v23, %v1870_v26 }
0x28a6   :  { %1874 = vrot.lane.b32.xlu0 %v1872_v27, %s2675_s3 }
0x2918   :  { %v1875_v30 = vpop.permute.xlu0 %1874 }
0x2919   :  { %v1877_v31 = vadd.f32 %v1875_v30, %v1867_v29 }
0x291b   :  { %2550 = vtanh.f32 %v1877_v31  ;;  %v1973_v48 = vrot.slane %v1877_v31, 6 }
0x2928   :  { %v2551_v32 = vpop.eup %2550 }
0x2929   :  { %1880 = vrot.lane.b32.xlu1 %v2551_v32, %s2674_s18 }
0x299b   :  { %v1881_v15 = vpop.permute.xlu1 %1880 }
0x299c   :  { %v1883_v33 = vmul.f32 %v2549_v23, %v1881_v15 }
0x299e   :  { %v1885_v34 = vrot.slane %v1883_v33, 4 }
0x29a0   :  { %1886 = vrot.lane.b32.xlu0 %v1885_v34, %s2675_s3 }
0x2a12   :  { %v1887_v13 = vpop.permute.xlu0 %1886 }
0x2a13   :  { %2438 = vmatmul.mubr.msk.f32.vlgmr.msra.gmra.mxu1 %vm185_vm2, %v1887_v13 }
0x2ad3   :  { %v1956_v35 = vpop.f32.mrf.mxu1 }
0x2ad4   :  { %v1961_v36 = vrot.slane %v1956_v35, 2 }
0x2ad5   :  { %v2439_v37 = vpop.f32.mrf.mxu1 }
0x2ad6   :  { %v1963_v39 = vadd.f32 %v1961_v36, %v2979_v12  ;;  %v1995_v12 = vld [vmem:[#allocation8 + $0x18] sm:$0xff] }
0x2ad7   :  { %2441 = vmatpush3.msra.mxu0 %v1995_v12 }
0x2ad8   :  { %v2147_v40 = vmul.f32 -1.442695, %v1963_v39  ;;  %2442 = vmatprep.subr.mxu0 %v2672_v0 }
0x2ad9   :  { %2443 = vmatpush3.msra.mxu0 %v1994_v52 }
0x2ada   :  { %2552 = vpow2.f32 %v2147_v40  ;;  %2444 = vmatprep.subr.mxu0 %v2672_v0 }
0x2adb   :  { %2445 = vmatpush3.msra.mxu0 %v1993_v53 }
0x2adc   :  { %2446 = vmatprep.subr.mxu0 %v2672_v0 }
0x2add   :  { %2447 = vmatpush3.msra.mxu0 %v1992_v54 }
0x2ae7   :  { %v2553_v41 = vpop.eup %2552 }
0x2ae8   :  { %v1967_v42 = vadd.f32 1.0, %v2553_v41 }
0x2aea   :  { %2554 = vrcp.f32 %v1967_v42 }
0x2af7   :  { %v2555_v43 = vpop.eup %2554 }
0x2af8   :  { %v1970_v44 = vmul.f32 2.0, %v2555_v43  ;;  %v1975_v49 = vmul.f32 %v2555_v43, %v1973_v48 }
0x2afa   :  { %v2148_v45 = vadd.f32 -1.0, %v1970_v44 }
0x2afc   :  { %1977 = vrot.lane.b32.xlu1 %v2148_v45, %s2674_s18 }
0x2b6e   :  { %v1978_v46 = vpop.permute.xlu1 %1977 }
0x2b6f   :  { %v1980_v47 = vmul.f32 %v2555_v43, %v1978_v46 }
0x2b71   :  { %1982 = vrot.lane.b32.xlu0 %v1980_v47, %s2675_s3 }
0x2be3   :  { %v1983_v50 = vpop.permute.xlu0 %1982 }
0x2be4   :  { %v1985_v51 = vadd.f32 %v1983_v50, %v1975_v49 }
0x2be6   :  { %2556 = vtanh.f32 %v1985_v51 }
0x2bf3   :  { %v2557_v55 = vpop.eup %2556 }
0x2bf4   :  { %1988 = vrot.lane.b32.xlu1 %v2557_v55, %s2674_s18 }
0x2c66   :  { %v1989_v11 = vpop.permute.xlu1 %1988 }
0x2c67   :  { %v1991_v56 = vmul.f32 %v2555_v43, %v1989_v11 }
0x2c69   :  { %v2004_v57 = vrot.slane %v1991_v56, 6 }
0x2c6b   :  { %2005 = vrot.lane.b32.xlu0 %v2004_v57, %s2675_s3 }
0x2cdd   :  { %v2006_v60 = vpop.permute.xlu0 %2005 }
0x2cde   :  { %2449 = vmatmul.mubr.msk.f32.vlgmr.msra.gmra.mxu0 %vm185_vm2, %v2006_v60 }
0x2d9e   :  { %v2075_v59 = vpop.f32.mrf.mxu0 }
0x2d9f   :  { %v2076_v0 = vadd.f32 %v2149_v58, %v2075_v59 }
0x2da0   :  { %v2450_v61 = vpop.f32.mrf.mxu0 }
0x2da1   :  { %2079 = vst [vmem:[#allocation10] sm:$0x3] %v2076_v0 }
0x2da2   :  { %2649 = shalt.err (!%p2646_p10)
}
0x2da3   :  { %2089 = dma.vmem_to_hbm [thread:$0]  %s2087_s23, 32, %s3100_s9, [#allocation4]  }
0x2da4   :  { %2664 = dma.done.wait [#allocation4], 32  }
0x2da5   :  { %2665 = vsyncadd [#allocation4], 4294967264 }
0x2da6   :  { %2093 = vsyncpa [#allocation3], 1 }
0x2da7   :  { %2094 = vsyncpa [#allocation6], 1 }
0x2da8   :  { %2095 = vsyncpa [#allocation9], 1 }
0x2da9   :  { %2096 = vsyncpa [#allocation4], 1 }

</bundles_post_ra>
